<compile_context>
chip_gen: v7x
topology: tpu7x:2x2x1
jax: 0.10.0
libtpu: 0.0.40
codegen_flags: <defaults>
</compile_context>

<pallas_src>
import functools

import jax
import jax.numpy as jnp
from jax.experimental import pallas as pl
from jax.experimental.pallas import tpu as pltpu

REL_HIDDEN = 32          # hidden width of the RelationNetwork MLP
GCN_OUT = 32             # GraphConvolution output dim (fixed by the module)
BN_EPS = 1e-5
_R = REL_HIDDEN
_PROJ_W = _R + GCN_OUT   # proj column layout: [G' (32) | GCN support (32)]
_VMEM_LIMIT = 48 * 1024 * 1024   # < 64 MiB physical VMEM on v7x


# ----------------------------- Pallas kernels ------------------------------ #

def _proj_kernel(feat_ref, featT_ref, wcat_ref, bcat_ref, w1tT_ref,
                 proj_ref, ht_ref):
    """Fused projection matmuls.

    proj columns: [0:R)        G' = X @ W1_bot + b1   (indexed by i)
                  [R:R+32)     S  = X @ Wg            (GCN support)
    ht = H^T = (X @ W1_top)^T, computed as W1_top^T @ X^T so the relation
    kernel can sublane-broadcast H rows without an in-kernel transpose.
    """
    proj_ref[...] = (jnp.dot(feat_ref[...], wcat_ref[...],
                             preferred_element_type=jnp.float32)
                     + bcat_ref[...])
    ht_ref[...] = jnp.dot(w1tT_ref[...], featT_ref[...],
                          preferred_element_type=jnp.float32)


def _relation_kernel(proj_i_ref, ht_j_ref, w2_ref, b2_ref, s_ref, d_ref):
    """Relation scores for an (i-block, j-block) tile, plus row-sum accumulator.

    scores[i, j] = sigmoid( sum_r relu(G'[i,r] + H[j,r]) * w2[r] + b2 )
    d[i]        += sum_j scores[i, j]        (accumulated over the j grid axis)
    """
    g = proj_i_ref[:, :_R]                # (tile_i, R), already includes +b1
    ht = ht_j_ref[...]                    # (R, tile_j)
    ti = g.shape[0]
    tj = ht.shape[1]

    logits = jnp.full((ti, tj), b2_ref[0, 0], dtype=jnp.float32)
    # Unrolled over the small hidden dim: every op is a lane-dense 2-D VPU op
    # (no 1-wide MXU matmul, no (ti*tj, R) intermediate).
    for r in range(_R):
        term = jnp.maximum(g[:, r:r + 1] + ht[r:r + 1, :], 0.0)
        logits = logits + term * w2_ref[0, r]

    s = jax.nn.sigmoid(logits)
    s_ref[...] = s

    @pl.when(pl.program_id(1) == 0)
    def _():
        d_ref[...] = jnp.zeros_like(d_ref)

    d_ref[...] += jnp.sum(s, axis=1, keepdims=True)


def _gcn_kernel(scores_ref, drow_ref, proj_ref, bg_ref, scale_ref, shift_ref,
                x_ref, a_ref):
    """Adjacency normalization (elementwise) + A @ support + folded BN + ReLU."""
    s = scores_ref[...]                           # (tile_i, N) relation scores
    tile_i, n = s.shape
    i0 = pl.program_id(0) * tile_i

    # d = rowsum(I + rel) + 1 = rowsum(rel) + 2  (exact torch semantics)
    dinv_i = jax.lax.rsqrt(jnp.sum(s, axis=1, keepdims=True) + 2.0)   # (tile_i,1)
    dinv_j = jax.lax.rsqrt(drow_ref[...] + 2.0)                       # (1, N)

    row = jax.lax.broadcasted_iota(jnp.int32, (tile_i, n), 0) + i0
    col = jax.lax.broadcasted_iota(jnp.int32, (tile_i, n), 1)
    eye = (row == col).astype(jnp.float32)

    # A = diag(1/sqrt(d)) @ (I + rel) @ diag(1/sqrt(d)) as an elementwise scale.
    a_blk = (s + eye) * dinv_i * dinv_j

    support = proj_ref[:, _R:]                                        # (N, 32)
    x = jnp.dot(a_blk, support, preferred_element_type=jnp.float32) + bg_ref[...]
    x = x * scale_ref[...] + shift_ref[...]   # folded BatchNorm1d (inference)
    x_ref[...] = jnp.maximum(x, 0.0)          # ReLU; dropout is identity in eval
    a_ref[...] = a_blk


# ------------------------------- wrapper ----------------------------------- #

def _pick_tile(n, unit, target):
    """Largest t <= target with t % unit == 0 and n % t == 0; else n (1 block)."""
    if n <= target:
        return n
    t = (target // unit) * unit
    while t >= unit:
        if n % t == 0:
            return t
        t -= unit
    return n


def _fs(shape):
    # whole array as a single block (1-D grid)
    return pl.BlockSpec(shape, lambda i: (0,) * len(shape))


def multi_gcn_relation_forward(features, params, *, tile_i=None, tile_j=None):
    features = features.astype(jnp.float32)
    N, D = features.shape

    if tile_i is None:
        tile_i = _pick_tile(N, 8, 256)
    if tile_j is None:
        tile_j = _pick_tile(N, 128, 512)
    assert N % tile_i == 0 and (tile_i == N or tile_i % 8 == 0), (N, tile_i)
    assert N % tile_j == 0 and (tile_j == N or tile_j % 128 == 0), (N, tile_j)
    nbi, nbj = N // tile_i, N // tile_j

    # Split W1 into the halves acting on f_j (top) and f_i (bottom).  The
    # bottom half and the GCN weight are fused into one matmul; b1 is folded
    # into the G' columns so the relation kernel never touches it.
    w1 = params["rel_w1"]                                  # (2D, R)
    w1_top, w1_bot = w1[:D], w1[D:]
    wcat = jnp.concatenate([w1_bot, params["gcn_w"]], axis=1)          # (D, 64)
    bcat = jnp.concatenate([params["rel_b1"].reshape(1, _R),
                            jnp.zeros((1, GCN_OUT), jnp.float32)], axis=1)
    feat_t = jnp.transpose(features)                       # (D, N) glue
    w1_top_t = jnp.transpose(w1_top)                       # (R, D) glue

    proj, ht = pl.pallas_call(
        _proj_kernel,
        grid=(1,),
        in_specs=[_fs((N, D)), _fs((D, N)), _fs((D, _PROJ_W)),
                  _fs((1, _PROJ_W)), _fs((_R, D))],
        out_specs=(_fs((N, _PROJ_W)), _fs((_R, N))),
        out_shape=(jax.ShapeDtypeStruct((N, _PROJ_W), jnp.float32),
                   jax.ShapeDtypeStruct((_R, N), jnp.float32)),
        compiler_params=pltpu.CompilerParams(vmem_limit_bytes=_VMEM_LIMIT),
    )(features, feat_t, wcat, bcat, w1_top_t)

    w2_row = params["rel_w2"].reshape(1, _R)
    b2 = params["rel_b2"].reshape(1, 1)

    scores, rowsum = pl.pallas_call(
        _relation_kernel,
        grid=(nbi, nbj),
        in_specs=[pl.BlockSpec((tile_i, _PROJ_W), lambda i, j: (i, 0)),
                  pl.BlockSpec((_R, tile_j), lambda i, j: (0, j)),
                  pl.BlockSpec(memory_space=pltpu.MemorySpace.SMEM),
                  pl.BlockSpec(memory_space=pltpu.MemorySpace.SMEM)],
        out_specs=(pl.BlockSpec((tile_i, tile_j), lambda i, j: (i, j)),
                   pl.BlockSpec((tile_i, 1), lambda i, j: (i, 0))),
        out_shape=(jax.ShapeDtypeStruct((N, N), jnp.float32),
                   jax.ShapeDtypeStruct((N, 1), jnp.float32)),
        compiler_params=pltpu.CompilerParams(
            dimension_semantics=("parallel", "arbitrary"),
            vmem_limit_bytes=_VMEM_LIMIT),
    )(proj, ht, w2_row, b2)

    d_row = jnp.reshape(rowsum, (1, N))   # glue: lane-major for the column scale

    # Pre-fold BatchNorm1d (inference): y = x * scale + shift.
    scale = (params["bn2_gamma"]
             * jax.lax.rsqrt(params["bn2_var"] + BN_EPS)).reshape(1, GCN_OUT)
    shift = (params["bn2_beta"].reshape(1, GCN_OUT)
             - params["bn2_mean"].reshape(1, GCN_OUT) * scale)
    bg = params["gcn_b"].reshape(1, GCN_OUT)

    x, A = pl.pallas_call(
        _gcn_kernel,
        grid=(nbi,),
        in_specs=[pl.BlockSpec((tile_i, N), lambda i: (i, 0)),
                  pl.BlockSpec((1, N), lambda i: (0, 0)),
                  pl.BlockSpec((N, _PROJ_W), lambda i: (0, 0)),
                  pl.BlockSpec((1, GCN_OUT), lambda i: (0, 0)),
                  pl.BlockSpec((1, GCN_OUT), lambda i: (0, 0)),
                  pl.BlockSpec((1, GCN_OUT), lambda i: (0, 0))],
        out_specs=(pl.BlockSpec((tile_i, GCN_OUT), lambda i: (i, 0)),
                   pl.BlockSpec((tile_i, N), lambda i: (i, 0))),
        out_shape=(jax.ShapeDtypeStruct((N, GCN_OUT), jnp.float32),
                   jax.ShapeDtypeStruct((N, N), jnp.float32)),
        compiler_params=pltpu.CompilerParams(
            dimension_semantics=("parallel",),
            vmem_limit_bytes=_VMEM_LIMIT),
    )(scores, d_row, proj, bg, scale, shift)
    return x, A


# --------------------------- pure-JAX reference ----------------------------- #

def reference_forward(features, params):
    """Direct transliteration of the torch forward (eval mode) for checking."""
    hp = jax.lax.Precision.HIGHEST
    N = features.shape[0]
    temp1 = jnp.tile(features, (N, 1))
    temp2 = jnp.reshape(jnp.tile(features, (1, N)), (N * N, -1))
    pairs = jnp.concatenate([temp1, temp2], axis=1)
    h = jnp.maximum(jnp.dot(pairs, params["rel_w1"], precision=hp)
                    + params["rel_b1"], 0.0)
    rel = jax.nn.sigmoid(jnp.dot(h, params["rel_w2"], precision=hp)
                         + params["rel_b2"]).reshape(N, N)
    A0 = jnp.eye(N, dtype=jnp.float32) + rel
    d = jnp.sum(A0, axis=1) + 1.0
    dinv = 1.0 / jnp.sqrt(d)
    A = A0 * dinv[:, None] * dinv[None, :]
    support = jnp.dot(features, params["gcn_w"], precision=hp)
    x = jnp.dot(A, support, precision=hp) + params["gcn_b"]
    x = ((x - params["bn2_mean"]) / jnp.sqrt(params["bn2_var"] + BN_EPS)
         * params["bn2_gamma"] + params["bn2_beta"])
    return jnp.maximum(x, 0.0), A


# ------------------------------ param init --------------------------------- #

def init_params(key, input_dim):
    ks = jax.random.split(key, 4)

    def kaiming(k, shape, fan_in):
        # kaiming_normal_(a=0, mode='fan_in'): std = sqrt(2 / fan_in)
        return (jnp.sqrt(2.0 / fan_in)
                * jax.random.normal(k, shape, dtype=jnp.float32))

    return {
        # RelationNetwork MLP: (2*D -> REL_HIDDEN -> 1)
        "rel_w1": kaiming(ks[0], (2 * input_dim, REL_HIDDEN), 2 * input_dim),
        "rel_b1": jnp.zeros((1, REL_HIDDEN), jnp.float32),
        "rel_w2": kaiming(ks[1], (REL_HIDDEN, 1), REL_HIDDEN),
        "rel_b2": jnp.zeros((1, 1), jnp.float32),
        # GraphConvolution
        "gcn_w": kaiming(ks[2], (input_dim, GCN_OUT), input_dim),
        "gcn_b": jnp.zeros((1, GCN_OUT), jnp.float32),
        # BatchNorm1d(32), inference statistics
        "bn2_gamma": jnp.ones((1, GCN_OUT), jnp.float32),
        "bn2_beta": jnp.zeros((1, GCN_OUT), jnp.float32),
        "bn2_mean": jnp.zeros((1, GCN_OUT), jnp.float32),
        "bn2_var": jnp.ones((1, GCN_OUT), jnp.float32),
    }


if __name__ == "__main__":
    key = jax.random.PRNGKey(0)
    k_feat, k_param, k_feat2, k_param2 = jax.random.split(key, 4)

    # --- small case: N=16 nodes, tile_i=8 forces a 2-step i grid ------------ #
    N, INPUT_DIM = 16, 32
    features = jax.random.normal(k_feat, (N, INPUT_DIM), dtype=jnp.float32)
    params = init_params(k_param, INPUT_DIM)

    fwd = jax.jit(functools.partial(multi_gcn_relation_forward, tile_i=8))
    x, A = fwd(features, params)
    jax.block_until_ready((x, A))

    assert x.shape == (N, GCN_OUT) and A.shape == (N, N)
    assert bool(jnp.all(jnp.isfinite(x))) and bool(jnp.all(jnp.isfinite(A)))

    x_ref, A_ref = reference_forward(features, params)
    assert bool(jnp.allclose(A, A_ref, rtol=1e-3, atol=1e-3)), "A mismatch (N=16)"
    assert bool(jnp.allclose(x, x_ref, rtol=1e-3, atol=1e-3)), "x mismatch (N=16)"

    # --- tiled case: N=256, 2x2 grid exercises the j-axis row-sum accumulator #
    N2, D2 = 256, 32
    features2 = jax.random.normal(k_feat2, (N2, D2), dtype=jnp.float32)
    params2 = init_params(k_param2, D2)

    fwd2 = jax.jit(functools.partial(multi_gcn_relation_forward,
                                     tile_i=128, tile_j=128))
    x2, A2 = fwd2(features2, params2)
    jax.block_until_ready((x2, A2))

    x2_ref, A2_ref = reference_forward(features2, params2)
    assert bool(jnp.allclose(A2, A2_ref, rtol=1e-3, atol=1e-3)), "A mismatch (N=256)"
    assert bool(jnp.allclose(x2, x2_ref, rtol=1e-3, atol=1e-3)), "x mismatch (N=256)"

    print("KERNEL_OK")
</pallas_src>

<mosaic_0001>
module attributes {stable_mosaic.version = 11 : i64} {
  func.func @_proj_kernel(%arg0: i32, %arg1: memref<16x32xf32, #tpu.memory_space<vmem>>, %arg2: memref<32x16xf32, #tpu.memory_space<vmem>>, %arg3: memref<32x64xf32, #tpu.memory_space<vmem>>, %arg4: memref<1x64xf32, #tpu.memory_space<vmem>>, %arg5: memref<32x32xf32, #tpu.memory_space<vmem>>, %arg6: memref<16x64xf32, #tpu.memory_space<vmem>>, %arg7: memref<32x16xf32, #tpu.memory_space<vmem>>) attributes {dimension_semantics = [#tpu.dimension_semantics<arbitrary>], iteration_bounds = array<i64: 1>, scalar_prefetch = 0 : i64, scratch_operands = 0 : i64, tpu.core_type = #tpu.core_type<tc>, window_params = [{pipeline_mode = #tpu.pipeline_mode<synchronous>, transform_indices = @transform_0, window_bounds = array<i64: 16, 32>}, {pipeline_mode = #tpu.pipeline_mode<synchronous>, transform_indices = @transform_1, window_bounds = array<i64: 32, 16>}, {pipeline_mode = #tpu.pipeline_mode<synchronous>, transform_indices = @transform_2, window_bounds = array<i64: 32, 64>}, {pipeline_mode = #tpu.pipeline_mode<synchronous>, transform_indices = @transform_3, window_bounds = array<i64: 1, 64>}, {pipeline_mode = #tpu.pipeline_mode<synchronous>, transform_indices = @transform_4, window_bounds = array<i64: 32, 32>}, {pipeline_mode = #tpu.pipeline_mode<synchronous>, transform_indices = @transform_5, window_bounds = array<i64: 16, 64>}, {pipeline_mode = #tpu.pipeline_mode<synchronous>, transform_indices = @transform_6, window_bounds = array<i64: 32, 16>}]} {
    %c0 = arith.constant 0 : index
    %c0_0 = arith.constant 0 : index
    %0 = vector.load %arg1[%c0, %c0_0] : memref<16x32xf32, #tpu.memory_space<vmem>>, vector<16x32xf32>
    %c0_1 = arith.constant 0 : index
    %c0_2 = arith.constant 0 : index
    %1 = vector.load %arg3[%c0_1, %c0_2] : memref<32x64xf32, #tpu.memory_space<vmem>>, vector<32x64xf32>
    %cst = arith.constant dense<0.000000e+00> : vector<16x64xf32>
    %2 = tpu.matmul %0, %1, %cst {dimension_numbers = #tpu.dot_dimension_numbers<[1], [0], [0], [1], [0, 0, 1, 1], [], []>} : vector<16x32xf32>, vector<32x64xf32>, vector<16x64xf32> -> vector<16x64xf32>
    %c0_3 = arith.constant 0 : index
    %c0_4 = arith.constant 0 : index
    %3 = vector.load %arg4[%c0_3, %c0_4] : memref<1x64xf32, #tpu.memory_space<vmem>>, vector<1x64xf32>
    %4 = vector.broadcast %3 : vector<1x64xf32> to vector<16x64xf32>
    %5 = arith.addf %2, %4 : vector<16x64xf32>
    %c0_5 = arith.constant 0 : index
    %c0_6 = arith.constant 0 : index
    %6 = vector.load %arg6[%c0_5, %c0_6] : memref<16x64xf32, #tpu.memory_space<vmem>>, vector<16x64xf32>
    tpu.vector_store %arg6[%c0_5, %c0_6], %5 {strides = array<i32>} : memref<16x64xf32, #tpu.memory_space<vmem>>, vector<16x64xf32>,
    %c0_7 = arith.constant 0 : index
    %c0_8 = arith.constant 0 : index
    %7 = vector.load %arg5[%c0_7, %c0_8] : memref<32x32xf32, #tpu.memory_space<vmem>>, vector<32x32xf32>
    %c0_9 = arith.constant 0 : index
    %c0_10 = arith.constant 0 : index
    %8 = vector.load %arg2[%c0_9, %c0_10] : memref<32x16xf32, #tpu.memory_space<vmem>>, vector<32x16xf32>
    %cst_11 = arith.constant dense<0.000000e+00> : vector<32x16xf32>
    %9 = tpu.matmul %7, %8, %cst_11 {dimension_numbers = #tpu.dot_dimension_numbers<[1], [0], [0], [1], [0, 0, 1, 1], [], []>} : vector<32x32xf32>, vector<32x16xf32>, vector<32x16xf32> -> vector<32x16xf32>
    %c0_12 = arith.constant 0 : index
    %c0_13 = arith.constant 0 : index
    %10 = vector.load %arg7[%c0_12, %c0_13] : memref<32x16xf32, #tpu.memory_space<vmem>>, vector<32x16xf32>
    tpu.vector_store %arg7[%c0_12, %c0_13], %9 {strides = array<i32>} : memref<32x16xf32, #tpu.memory_space<vmem>>, vector<32x16xf32>,
    return
  }
  func.func @transform_0(%arg0: i32) -> (i32, i32) {
    %c0_i32 = arith.constant 0 : i32
    %c0_i32_0 = arith.constant 0 : i32
    %c0_i32_1 = arith.constant 0 : i32
    return %c0_i32, %c0_i32_0 : i32, i32
  }
  func.func @transform_1(%arg0: i32) -> (i32, i32) {
    %c0_i32 = arith.constant 0 : i32
    %c0_i32_0 = arith.constant 0 : i32
    %c0_i32_1 = arith.constant 0 : i32
    return %c0_i32, %c0_i32_0 : i32, i32
  }
  func.func @transform_2(%arg0: i32) -> (i32, i32) {
    %c0_i32 = arith.constant 0 : i32
    %c0_i32_0 = arith.constant 0 : i32
    %c0_i32_1 = arith.constant 0 : i32
    return %c0_i32, %c0_i32_0 : i32, i32
  }
  func.func @transform_3(%arg0: i32) -> (i32, i32) {
    %c0_i32 = arith.constant 0 : i32
    %c0_i32_0 = arith.constant 0 : i32
    %c0_i32_1 = arith.constant 0 : i32
    return %c0_i32, %c0_i32_0 : i32, i32
  }
  func.func @transform_4(%arg0: i32) -> (i32, i32) {
    %c0_i32 = arith.constant 0 : i32
    %c0_i32_0 = arith.constant 0 : i32
    %c0_i32_1 = arith.constant 0 : i32
    return %c0_i32, %c0_i32_0 : i32, i32
  }
  func.func @transform_5(%arg0: i32) -> (i32, i32) {
    %c0_i32 = arith.constant 0 : i32
    %c0_i32_0 = arith.constant 0 : i32
    %c0_i32_1 = arith.constant 0 : i32
    return %c0_i32, %c0_i32_0 : i32, i32
  }
  func.func @transform_6(%arg0: i32) -> (i32, i32) {
    %c0_i32 = arith.constant 0 : i32
    %c0_i32_0 = arith.constant 0 : i32
    %c0_i32_1 = arith.constant 0 : i32
    return %c0_i32, %c0_i32_0 : i32, i32
  }
}

module attributes {stable_mosaic.version = 11 : i64} {
  func.func @_gcn_kernel(%arg0: i32, %arg1: memref<8x16xf32, #tpu.memory_space<vmem>>, %arg2: memref<1x16xf32, #tpu.memory_space<vmem>>, %arg3: memref<16x64xf32, #tpu.memory_space<vmem>>, %arg4: memref<1x32xf32, #tpu.memory_space<vmem>>, %arg5: memref<1x32xf32, #tpu.memory_space<vmem>>, %arg6: memref<1x32xf32, #tpu.memory_space<vmem>>, %arg7: memref<8x32xf32, #tpu.memory_space<vmem>>, %arg8: memref<8x16xf32, #tpu.memory_space<vmem>>) attributes {dimension_semantics = [#tpu.dimension_semantics<parallel>], iteration_bounds = array<i64: 2>, scalar_prefetch = 0 : i64, scratch_operands = 0 : i64, tpu.core_type = #tpu.core_type<tc>, window_params = [{transform_indices = @transform_0, window_bounds = array<i64: 8, 16>}, {pipeline_mode = #tpu.pipeline_mode<synchronous>, transform_indices = @transform_1, window_bounds = array<i64: 1, 16>}, {pipeline_mode = #tpu.pipeline_mode<synchronous>, transform_indices = @transform_2, window_bounds = array<i64: 16, 64>}, {pipeline_mode = #tpu.pipeline_mode<synchronous>, transform_indices = @transform_3, window_bounds = array<i64: 1, 32>}, {pipeline_mode = #tpu.pipeline_mode<synchronous>, transform_indices = @transform_4, window_bounds = array<i64: 1, 32>}, {pipeline_mode = #tpu.pipeline_mode<synchronous>, transform_indices = @transform_5, window_bounds = array<i64: 1, 32>}, {transform_indices = @transform_6, window_bounds = array<i64: 8, 32>}, {transform_indices = @transform_7, window_bounds = array<i64: 8, 16>}]} {
    %c0 = arith.constant 0 : index
    %c0_0 = arith.constant 0 : index
    %0 = vector.load %arg1[%c0, %c0_0] : memref<8x16xf32, #tpu.memory_space<vmem>>, vector<8x16xf32>
    %c8_i32 = arith.constant 8 : i32
    %1 = arith.muli %arg0, %c8_i32 : i32
    %cst = arith.constant dense<0.000000e+00> : vector<8xf32>
    %2 = vector.multi_reduction <add>, %0, %cst [1] : vector<8x16xf32> to vector<8xf32>
    %3 = vector.shape_cast %2 : vector<8xf32> to vector<8x1xf32>
    %cst_1 = arith.constant 2.000000e+00 : f32
    %4 = vector.broadcast %cst_1 : f32 to vector<8x1xf32>
    %5 = arith.addf %3, %4 : vector<8x1xf32>
    %6 = math.rsqrt %5 : vector<8x1xf32>
    %c0_2 = arith.constant 0 : index
    %c0_3 = arith.constant 0 : index
    %7 = vector.load %arg2[%c0_2, %c0_3] : memref<1x16xf32, #tpu.memory_space<vmem>>, vector<1x16xf32>
    %cst_4 = arith.constant 2.000000e+00 : f32
    %8 = vector.broadcast %cst_4 : f32 to vector<1x16xf32>
    %9 = arith.addf %7, %8 : vector<1x16xf32>
    %10 = math.rsqrt %9 : vector<1x16xf32>
    %11 = tpu.iota {dimensions = array<i32: 0>} : vector<8x16xi32>
    %12 = vector.broadcast %1 : i32 to vector<8x16xi32>
    %13 = arith.addi %11, %12 : vector<8x16xi32>
    %14 = tpu.iota {dimensions = array<i32: 1>} : vector<8x16xi32>
    %15 = arith.cmpi eq, %13, %14 : vector<8x16xi32>
    %16 = arith.extui %15 : vector<8x16xi1> to vector<8x16xi32>
    %17 = arith.sitofp %16 : vector<8x16xi32> to vector<8x16xf32>
    %18 = arith.addf %0, %17 : vector<8x16xf32>
    %19 = vector.broadcast %6 : vector<8x1xf32> to vector<8x16xf32>
    %20 = arith.mulf %18, %19 : vector<8x16xf32>
    %21 = vector.broadcast %10 : vector<1x16xf32> to vector<8x16xf32>
    %22 = arith.mulf %20, %21 : vector<8x16xf32>
    %c0_5 = arith.constant 0 : index
    %c32 = arith.constant 32 : index
    %23 = vector.load %arg3[%c0_5, %c32] : memref<16x64xf32, #tpu.memory_space<vmem>>, vector<16x32xf32>
    %cst_6 = arith.constant dense<0.000000e+00> : vector<8x32xf32>
    %24 = tpu.matmul %22, %23, %cst_6 {dimension_numbers = #tpu.dot_dimension_numbers<[1], [0], [0], [1], [0, 0, 1, 1], [], []>} : vector<8x16xf32>, vector<16x32xf32>, vector<8x32xf32> -> vector<8x32xf32>
    %c0_7 = arith.constant 0 : index
    %c0_8 = arith.constant 0 : index
    %25 = vector.load %arg4[%c0_7, %c0_8] : memref<1x32xf32, #tpu.memory_space<vmem>>, vector<1x32xf32>
    %26 = vector.broadcast %25 : vector<1x32xf32> to vector<8x32xf32>
    %27 = arith.addf %24, %26 : vector<8x32xf32>
    %c0_9 = arith.constant 0 : index
    %c0_10 = arith.constant 0 : index
    %28 = vector.load %arg5[%c0_9, %c0_10] : memref<1x32xf32, #tpu.memory_space<vmem>>, vector<1x32xf32>
    %29 = vector.broadcast %28 : vector<1x32xf32> to vector<8x32xf32>
    %30 = arith.mulf %27, %29 : vector<8x32xf32>
    %c0_11 = arith.constant 0 : index
    %c0_12 = arith.constant 0 : index
    %31 = vector.load %arg6[%c0_11, %c0_12] : memref<1x32xf32, #tpu.memory_space<vmem>>, vector<1x32xf32>
    %32 = vector.broadcast %31 : vector<1x32xf32> to vector<8x32xf32>
    %33 = arith.addf %30, %32 : vector<8x32xf32>
    %cst_13 = arith.constant 0.000000e+00 : f32
    %34 = vector.broadcast %cst_13 : f32 to vector<8x32xf32>
    %35 = arith.maximumf %33, %34 : vector<8x32xf32>
    %c0_14 = arith.constant 0 : index
    %c0_15 = arith.constant 0 : index
    %36 = vector.load %arg7[%c0_14, %c0_15] : memref<8x32xf32, #tpu.memory_space<vmem>>, vector<8x32xf32>
    tpu.vector_store %arg7[%c0_14, %c0_15], %35 {strides = array<i32>} : memref<8x32xf32, #tpu.memory_space<vmem>>, vector<8x32xf32>,
    %c0_16 = arith.constant 0 : index
    %c0_17 = arith.constant 0 : index
    %37 = vector.load %arg8[%c0_16, %c0_17] : memref<8x16xf32, #tpu.memory_space<vmem>>, vector<8x16xf32>
    tpu.vector_store %arg8[%c0_16, %c0_17], %22 {strides = array<i32>} : memref<8x16xf32, #tpu.memory_space<vmem>>, vector<8x16xf32>,
    return
  }
  func.func @transform_0(%arg0: i32) -> (i32, i32) {
    %c0_i32 = arith.constant 0 : i32
    %c0_i32_0 = arith.constant 0 : i32
    return %arg0, %c0_i32 : i32, i32
  }
  func.func @transform_1(%arg0: i32) -> (i32, i32) {
    %c0_i32 = arith.constant 0 : i32
    %c0_i32_0 = arith.constant 0 : i32
    %c0_i32_1 = arith.constant 0 : i32
    return %c0_i32, %c0_i32_0 : i32, i32
  }
  func.func @transform_2(%arg0: i32) -> (i32, i32) {
    %c0_i32 = arith.constant 0 : i32
    %c0_i32_0 = arith.constant 0 : i32
    %c0_i32_1 = arith.constant 0 : i32
    return %c0_i32, %c0_i32_0 : i32, i32
  }
  func.func @transform_3(%arg0: i32) -> (i32, i32) {
    %c0_i32 = arith.constant 0 : i32
    %c0_i32_0 = arith.constant 0 : i32
    %c0_i32_1 = arith.constant 0 : i32
    return %c0_i32, %c0_i32_0 : i32, i32
  }
  func.func @transform_4(%arg0: i32) -> (i32, i32) {
    %c0_i32 = arith.constant 0 : i32
    %c0_i32_0 = arith.constant 0 : i32
    %c0_i32_1 = arith.constant 0 : i32
    return %c0_i32, %c0_i32_0 : i32, i32
  }
  func.func @transform_5(%arg0: i32) -> (i32, i32) {
    %c0_i32 = arith.constant 0 : i32
    %c0_i32_0 = arith.constant 0 : i32
    %c0_i32_1 = arith.constant 0 : i32
    return %c0_i32, %c0_i32_0 : i32, i32
  }
  func.func @transform_6(%arg0: i32) -> (i32, i32) {
    %c0_i32 = arith.constant 0 : i32
    %c0_i32_0 = arith.constant 0 : i32
    return %arg0, %c0_i32 : i32, i32
  }
  func.func @transform_7(%arg0: i32) -> (i32, i32) {
    %c0_i32 = arith.constant 0 : i32
    %c0_i32_0 = arith.constant 0 : i32
    return %arg0, %c0_i32 : i32, i32
  }
}

module attributes {stable_mosaic.version = 11 : i64} {
  func.func @_relation_kernel(%arg0: i32, %arg1: i32, %arg2: memref<8x64xf32, #tpu.memory_space<vmem>>, %arg3: memref<32x16xf32, #tpu.memory_space<vmem>>, %arg4: memref<1x32xf32, #tpu.memory_space<smem>>, %arg5: memref<1x1xf32, #tpu.memory_space<smem>>, %arg6: memref<8x16xf32, #tpu.memory_space<vmem>>, %arg7: memref<8x1xf32, #tpu.memory_space<vmem>>) attributes {dimension_semantics = [#tpu.dimension_semantics<parallel>, #tpu.dimension_semantics<arbitrary>], iteration_bounds = array<i64: 2, 1>, scalar_prefetch = 0 : i64, scratch_operands = 0 : i64, tpu.core_type = #tpu.core_type<tc>, window_params = [{transform_indices = @transform_0, window_bounds = array<i64: 8, 64>}, {transform_indices = @transform_1, window_bounds = array<i64: 32, 16>}, {transform_indices = @transform_2, window_bounds = array<i64: 1, 32>}, {transform_indices = @transform_3, window_bounds = array<i64: 1, 1>}, {transform_indices = @transform_4, window_bounds = array<i64: 8, 16>}, {transform_indices = @transform_5, window_bounds = array<i64: 8, 1>}]} {
    %c0 = arith.constant 0 : index
    %c0_0 = arith.constant 0 : index
    %0 = vector.load %arg2[%c0, %c0_0] : memref<8x64xf32, #tpu.memory_space<vmem>>, vector<8x32xf32>
    %c0_1 = arith.constant 0 : index
    %c0_2 = arith.constant 0 : index
    %1 = vector.load %arg3[%c0_1, %c0_2] : memref<32x16xf32, #tpu.memory_space<vmem>>, vector<32x16xf32>
    %c0_3 = arith.constant 0 : index
    %c0_4 = arith.constant 0 : index
    %2 = memref.load %arg5[%c0_3, %c0_4] : memref<1x1xf32, #tpu.memory_space<smem>>
    %3 = vector.broadcast %2 : f32 to vector<8x16xf32>
    %4 = vector.extract_strided_slice %0 {offsets = [0, 0], sizes = [8, 1], strides = [1, 1]} : vector<8x32xf32> to vector<8x1xf32>
    %5 = vector.extract_strided_slice %1 {offsets = [0, 0], sizes = [1, 16], strides = [1, 1]} : vector<32x16xf32> to vector<1x16xf32>
    %6 = vector.broadcast %4 : vector<8x1xf32> to vector<8x16xf32>
    %7 = vector.broadcast %5 : vector<1x16xf32> to vector<8x16xf32>
    %8 = arith.addf %6, %7 : vector<8x16xf32>
    %cst = arith.constant 0.000000e+00 : f32
    %9 = vector.broadcast %cst : f32 to vector<8x16xf32>
    %10 = arith.maximumf %8, %9 : vector<8x16xf32>
    %c0_5 = arith.constant 0 : index
    %c0_6 = arith.constant 0 : index
    %11 = memref.load %arg4[%c0_5, %c0_6] : memref<1x32xf32, #tpu.memory_space<smem>>
    %12 = vector.broadcast %11 : f32 to vector<8x16xf32>
    %13 = arith.mulf %10, %12 : vector<8x16xf32>
    %14 = arith.addf %3, %13 : vector<8x16xf32>
    %15 = vector.extract_strided_slice %0 {offsets = [0, 1], sizes = [8, 1], strides = [1, 1]} : vector<8x32xf32> to vector<8x1xf32>
    %16 = vector.extract_strided_slice %1 {offsets = [1, 0], sizes = [1, 16], strides = [1, 1]} : vector<32x16xf32> to vector<1x16xf32>
    %17 = vector.broadcast %15 : vector<8x1xf32> to vector<8x16xf32>
    %18 = vector.broadcast %16 : vector<1x16xf32> to vector<8x16xf32>
    %19 = arith.addf %17, %18 : vector<8x16xf32>
    %cst_7 = arith.constant 0.000000e+00 : f32
    %20 = vector.broadcast %cst_7 : f32 to vector<8x16xf32>
    %21 = arith.maximumf %19, %20 : vector<8x16xf32>
    %c0_8 = arith.constant 0 : index
    %c1 = arith.constant 1 : index
    %22 = memref.load %arg4[%c0_8, %c1] : memref<1x32xf32, #tpu.memory_space<smem>>
    %23 = vector.broadcast %22 : f32 to vector<8x16xf32>
    %24 = arith.mulf %21, %23 : vector<8x16xf32>
    %25 = arith.addf %14, %24 : vector<8x16xf32>
    %26 = vector.extract_strided_slice %0 {offsets = [0, 2], sizes = [8, 1], strides = [1, 1]} : vector<8x32xf32> to vector<8x1xf32>
    %27 = vector.extract_strided_slice %1 {offsets = [2, 0], sizes = [1, 16], strides = [1, 1]} : vector<32x16xf32> to vector<1x16xf32>
    %28 = vector.broadcast %26 : vector<8x1xf32> to vector<8x16xf32>
    %29 = vector.broadcast %27 : vector<1x16xf32> to vector<8x16xf32>
    %30 = arith.addf %28, %29 : vector<8x16xf32>
    %cst_9 = arith.constant 0.000000e+00 : f32
    %31 = vector.broadcast %cst_9 : f32 to vector<8x16xf32>
    %32 = arith.maximumf %30, %31 : vector<8x16xf32>
    %c0_10 = arith.constant 0 : index
    %c2 = arith.constant 2 : index
    %33 = memref.load %arg4[%c0_10, %c2] : memref<1x32xf32, #tpu.memory_space<smem>>
    %34 = vector.broadcast %33 : f32 to vector<8x16xf32>
    %35 = arith.mulf %32, %34 : vector<8x16xf32>
    %36 = arith.addf %25, %35 : vector<8x16xf32>
    %37 = vector.extract_strided_slice %0 {offsets = [0, 3], sizes = [8, 1], strides = [1, 1]} : vector<8x32xf32> to vector<8x1xf32>
    %38 = vector.extract_strided_slice %1 {offsets = [3, 0], sizes = [1, 16], strides = [1, 1]} : vector<32x16xf32> to vector<1x16xf32>
    %39 = vector.broadcast %37 : vector<8x1xf32> to vector<8x16xf32>
    %40 = vector.broadcast %38 : vector<1x16xf32> to vector<8x16xf32>
    %41 = arith.addf %39, %40 : vector<8x16xf32>
    %cst_11 = arith.constant 0.000000e+00 : f32
    %42 = vector.broadcast %cst_11 : f32 to vector<8x16xf32>
    %43 = arith.maximumf %41, %42 : vector<8x16xf32>
    %c0_12 = arith.constant 0 : index
    %c3 = arith.constant 3 : index
    %44 = memref.load %arg4[%c0_12, %c3] : memref<1x32xf32, #tpu.memory_space<smem>>
    %45 = vector.broadcast %44 : f32 to vector<8x16xf32>
    %46 = arith.mulf %43, %45 : vector<8x16xf32>
    %47 = arith.addf %36, %46 : vector<8x16xf32>
    %48 = vector.extract_strided_slice %0 {offsets = [0, 4], sizes = [8, 1], strides = [1, 1]} : vector<8x32xf32> to vector<8x1xf32>
    %49 = vector.extract_strided_slice %1 {offsets = [4, 0], sizes = [1, 16], strides = [1, 1]} : vector<32x16xf32> to vector<1x16xf32>
    %50 = vector.broadcast %48 : vector<8x1xf32> to vector<8x16xf32>
    %51 = vector.broadcast %49 : vector<1x16xf32> to vector<8x16xf32>
    %52 = arith.addf %50, %51 : vector<8x16xf32>
    %cst_13 = arith.constant 0.000000e+00 : f32
    %53 = vector.broadcast %cst_13 : f32 to vector<8x16xf32>
    %54 = arith.maximumf %52, %53 : vector<8x16xf32>
    %c0_14 = arith.constant 0 : index
    %c4 = arith.constant 4 : index
    %55 = memref.load %arg4[%c0_14, %c4] : memref<1x32xf32, #tpu.memory_space<smem>>
    %56 = vector.broadcast %55 : f32 to vector<8x16xf32>
    %57 = arith.mulf %54, %56 : vector<8x16xf32>
    %58 = arith.addf %47, %57 : vector<8x16xf32>
    %59 = vector.extract_strided_slice %0 {offsets = [0, 5], sizes = [8, 1], strides = [1, 1]} : vector<8x32xf32> to vector<8x1xf32>
    %60 = vector.extract_strided_slice %1 {offsets = [5, 0], sizes = [1, 16], strides = [1, 1]} : vector<32x16xf32> to vector<1x16xf32>
    %61 = vector.broadcast %59 : vector<8x1xf32> to vector<8x16xf32>
    %62 = vector.broadcast %60 : vector<1x16xf32> to vector<8x16xf32>
    %63 = arith.addf %61, %62 : vector<8x16xf32>
    %cst_15 = arith.constant 0.000000e+00 : f32
    %64 = vector.broadcast %cst_15 : f32 to vector<8x16xf32>
    %65 = arith.maximumf %63, %64 : vector<8x16xf32>
    %c0_16 = arith.constant 0 : index
    %c5 = arith.constant 5 : index
    %66 = memref.load %arg4[%c0_16, %c5] : memref<1x32xf32, #tpu.memory_space<smem>>
    %67 = vector.broadcast %66 : f32 to vector<8x16xf32>
    %68 = arith.mulf %65, %67 : vector<8x16xf32>
    %69 = arith.addf %58, %68 : vector<8x16xf32>
    %70 = vector.extract_strided_slice %0 {offsets = [0, 6], sizes = [8, 1], strides = [1, 1]} : vector<8x32xf32> to vector<8x1xf32>
    %71 = vector.extract_strided_slice %1 {offsets = [6, 0], sizes = [1, 16], strides = [1, 1]} : vector<32x16xf32> to vector<1x16xf32>
    %72 = vector.broadcast %70 : vector<8x1xf32> to vector<8x16xf32>
    %73 = vector.broadcast %71 : vector<1x16xf32> to vector<8x16xf32>
    %74 = arith.addf %72, %73 : vector<8x16xf32>
    %cst_17 = arith.constant 0.000000e+00 : f32
    %75 = vector.broadcast %cst_17 : f32 to vector<8x16xf32>
    %76 = arith.maximumf %74, %75 : vector<8x16xf32>
    %c0_18 = arith.constant 0 : index
    %c6 = arith.constant 6 : index
    %77 = memref.load %arg4[%c0_18, %c6] : memref<1x32xf32, #tpu.memory_space<smem>>
    %78 = vector.broadcast %77 : f32 to vector<8x16xf32>
    %79 = arith.mulf %76, %78 : vector<8x16xf32>
    %80 = arith.addf %69, %79 : vector<8x16xf32>
    %81 = vector.extract_strided_slice %0 {offsets = [0, 7], sizes = [8, 1], strides = [1, 1]} : vector<8x32xf32> to vector<8x1xf32>
    %82 = vector.extract_strided_slice %1 {offsets = [7, 0], sizes = [1, 16], strides = [1, 1]} : vector<32x16xf32> to vector<1x16xf32>
    %83 = vector.broadcast %81 : vector<8x1xf32> to vector<8x16xf32>
    %84 = vector.broadcast %82 : vector<1x16xf32> to vector<8x16xf32>
    %85 = arith.addf %83, %84 : vector<8x16xf32>
    %cst_19 = arith.constant 0.000000e+00 : f32
    %86 = vector.broadcast %cst_19 : f32 to vector<8x16xf32>
    %87 = arith.maximumf %85, %86 : vector<8x16xf32>
    %c0_20 = arith.constant 0 : index
    %c7 = arith.constant 7 : index
    %88 = memref.load %arg4[%c0_20, %c7] : memref<1x32xf32, #tpu.memory_space<smem>>
    %89 = vector.broadcast %88 : f32 to vector<8x16xf32>
    %90 = arith.mulf %87, %89 : vector<8x16xf32>
    %91 = arith.addf %80, %90 : vector<8x16xf32>
    %92 = vector.extract_strided_slice %0 {offsets = [0, 8], sizes = [8, 1], strides = [1, 1]} : vector<8x32xf32> to vector<8x1xf32>
    %93 = vector.extract_strided_slice %1 {offsets = [8, 0], sizes = [1, 16], strides = [1, 1]} : vector<32x16xf32> to vector<1x16xf32>
    %94 = vector.broadcast %92 : vector<8x1xf32> to vector<8x16xf32>
    %95 = vector.broadcast %93 : vector<1x16xf32> to vector<8x16xf32>
    %96 = arith.addf %94, %95 : vector<8x16xf32>
    %cst_21 = arith.constant 0.000000e+00 : f32
    %97 = vector.broadcast %cst_21 : f32 to vector<8x16xf32>
    %98 = arith.maximumf %96, %97 : vector<8x16xf32>
    %c0_22 = arith.constant 0 : index
    %c8 = arith.constant 8 : index
    %99 = memref.load %arg4[%c0_22, %c8] : memref<1x32xf32, #tpu.memory_space<smem>>
    %100 = vector.broadcast %99 : f32 to vector<8x16xf32>
    %101 = arith.mulf %98, %100 : vector<8x16xf32>
    %102 = arith.addf %91, %101 : vector<8x16xf32>
    %103 = vector.extract_strided_slice %0 {offsets = [0, 9], sizes = [8, 1], strides = [1, 1]} : vector<8x32xf32> to vector<8x1xf32>
    %104 = vector.extract_strided_slice %1 {offsets = [9, 0], sizes = [1, 16], strides = [1, 1]} : vector<32x16xf32> to vector<1x16xf32>
    %105 = vector.broadcast %103 : vector<8x1xf32> to vector<8x16xf32>
    %106 = vector.broadcast %104 : vector<1x16xf32> to vector<8x16xf32>
    %107 = arith.addf %105, %106 : vector<8x16xf32>
    %cst_23 = arith.constant 0.000000e+00 : f32
    %108 = vector.broadcast %cst_23 : f32 to vector<8x16xf32>
    %109 = arith.maximumf %107, %108 : vector<8x16xf32>
    %c0_24 = arith.constant 0 : index
    %c9 = arith.constant 9 : index
    %110 = memref.load %arg4[%c0_24, %c9] : memref<1x32xf32, #tpu.memory_space<smem>>
    %111 = vector.broadcast %110 : f32 to vector<8x16xf32>
    %112 = arith.mulf %109, %111 : vector<8x16xf32>
    %113 = arith.addf %102, %112 : vector<8x16xf32>
    %114 = vector.extract_strided_slice %0 {offsets = [0, 10], sizes = [8, 1], strides = [1, 1]} : vector<8x32xf32> to vector<8x1xf32>
    %115 = vector.extract_strided_slice %1 {offsets = [10, 0], sizes = [1, 16], strides = [1, 1]} : vector<32x16xf32> to vector<1x16xf32>
    %116 = vector.broadcast %114 : vector<8x1xf32> to vector<8x16xf32>
    %117 = vector.broadcast %115 : vector<1x16xf32> to vector<8x16xf32>
    %118 = arith.addf %116, %117 : vector<8x16xf32>
    %cst_25 = arith.constant 0.000000e+00 : f32
    %119 = vector.broadcast %cst_25 : f32 to vector<8x16xf32>
    %120 = arith.maximumf %118, %119 : vector<8x16xf32>
    %c0_26 = arith.constant 0 : index
    %c10 = arith.constant 10 : index
    %121 = memref.load %arg4[%c0_26, %c10] : memref<1x32xf32, #tpu.memory_space<smem>>
    %122 = vector.broadcast %121 : f32 to vector<8x16xf32>
    %123 = arith.mulf %120, %122 : vector<8x16xf32>
    %124 = arith.addf %113, %123 : vector<8x16xf32>
    %125 = vector.extract_strided_slice %0 {offsets = [0, 11], sizes = [8, 1], strides = [1, 1]} : vector<8x32xf32> to vector<8x1xf32>
    %126 = vector.extract_strided_slice %1 {offsets = [11, 0], sizes = [1, 16], strides = [1, 1]} : vector<32x16xf32> to vector<1x16xf32>
    %127 = vector.broadcast %125 : vector<8x1xf32> to vector<8x16xf32>
    %128 = vector.broadcast %126 : vector<1x16xf32> to vector<8x16xf32>
    %129 = arith.addf %127, %128 : vector<8x16xf32>
    %cst_27 = arith.constant 0.000000e+00 : f32
    %130 = vector.broadcast %cst_27 : f32 to vector<8x16xf32>
    %131 = arith.maximumf %129, %130 : vector<8x16xf32>
    %c0_28 = arith.constant 0 : index
    %c11 = arith.constant 11 : index
    %132 = memref.load %arg4[%c0_28, %c11] : memref<1x32xf32, #tpu.memory_space<smem>>
    %133 = vector.broadcast %132 : f32 to vector<8x16xf32>
    %134 = arith.mulf %131, %133 : vector<8x16xf32>
    %135 = arith.addf %124, %134 : vector<8x16xf32>
    %136 = vector.extract_strided_slice %0 {offsets = [0, 12], sizes = [8, 1], strides = [1, 1]} : vector<8x32xf32> to vector<8x1xf32>
    %137 = vector.extract_strided_slice %1 {offsets = [12, 0], sizes = [1, 16], strides = [1, 1]} : vector<32x16xf32> to vector<1x16xf32>
    %138 = vector.broadcast %136 : vector<8x1xf32> to vector<8x16xf32>
    %139 = vector.broadcast %137 : vector<1x16xf32> to vector<8x16xf32>
    %140 = arith.addf %138, %139 : vector<8x16xf32>
    %cst_29 = arith.constant 0.000000e+00 : f32
    %141 = vector.broadcast %cst_29 : f32 to vector<8x16xf32>
    %142 = arith.maximumf %140, %141 : vector<8x16xf32>
    %c0_30 = arith.constant 0 : index
    %c12 = arith.constant 12 : index
    %143 = memref.load %arg4[%c0_30, %c12] : memref<1x32xf32, #tpu.memory_space<smem>>
    %144 = vector.broadcast %143 : f32 to vector<8x16xf32>
    %145 = arith.mulf %142, %144 : vector<8x16xf32>
    %146 = arith.addf %135, %145 : vector<8x16xf32>
    %147 = vector.extract_strided_slice %0 {offsets = [0, 13], sizes = [8, 1], strides = [1, 1]} : vector<8x32xf32> to vector<8x1xf32>
    %148 = vector.extract_strided_slice %1 {offsets = [13, 0], sizes = [1, 16], strides = [1, 1]} : vector<32x16xf32> to vector<1x16xf32>
    %149 = vector.broadcast %147 : vector<8x1xf32> to vector<8x16xf32>
    %150 = vector.broadcast %148 : vector<1x16xf32> to vector<8x16xf32>
    %151 = arith.addf %149, %150 : vector<8x16xf32>
    %cst_31 = arith.constant 0.000000e+00 : f32
    %152 = vector.broadcast %cst_31 : f32 to vector<8x16xf32>
    %153 = arith.maximumf %151, %152 : vector<8x16xf32>
    %c0_32 = arith.constant 0 : index
    %c13 = arith.constant 13 : index
    %154 = memref.load %arg4[%c0_32, %c13] : memref<1x32xf32, #tpu.memory_space<smem>>
    %155 = vector.broadcast %154 : f32 to vector<8x16xf32>
    %156 = arith.mulf %153, %155 : vector<8x16xf32>
    %157 = arith.addf %146, %156 : vector<8x16xf32>
    %158 = vector.extract_strided_slice %0 {offsets = [0, 14], sizes = [8, 1], strides = [1, 1]} : vector<8x32xf32> to vector<8x1xf32>
    %159 = vector.extract_strided_slice %1 {offsets = [14, 0], sizes = [1, 16], strides = [1, 1]} : vector<32x16xf32> to vector<1x16xf32>
    %160 = vector.broadcast %158 : vector<8x1xf32> to vector<8x16xf32>
    %161 = vector.broadcast %159 : vector<1x16xf32> to vector<8x16xf32>
    %162 = arith.addf %160, %161 : vector<8x16xf32>
    %cst_33 = arith.constant 0.000000e+00 : f32
    %163 = vector.broadcast %cst_33 : f32 to vector<8x16xf32>
    %164 = arith.maximumf %162, %163 : vector<8x16xf32>
    %c0_34 = arith.constant 0 : index
    %c14 = arith.constant 14 : index
    %165 = memref.load %arg4[%c0_34, %c14] : memref<1x32xf32, #tpu.memory_space<smem>>
    %166 = vector.broadcast %165 : f32 to vector<8x16xf32>
    %167 = arith.mulf %164, %166 : vector<8x16xf32>
    %168 = arith.addf %157, %167 : vector<8x16xf32>
    %169 = vector.extract_strided_slice %0 {offsets = [0, 15], sizes = [8, 1], strides = [1, 1]} : vector<8x32xf32> to vector<8x1xf32>
    %170 = vector.extract_strided_slice %1 {offsets = [15, 0], sizes = [1, 16], strides = [1, 1]} : vector<32x16xf32> to vector<1x16xf32>
    %171 = vector.broadcast %169 : vector<8x1xf32> to vector<8x16xf32>
    %172 = vector.broadcast %170 : vector<1x16xf32> to vector<8x16xf32>
    %173 = arith.addf %171, %172 : vector<8x16xf32>
    %cst_35 = arith.constant 0.000000e+00 : f32
    %174 = vector.broadcast %cst_35 : f32 to vector<8x16xf32>
    %175 = arith.maximumf %173, %174 : vector<8x16xf32>
    %c0_36 = arith.constant 0 : index
    %c15 = arith.constant 15 : index
    %176 = memref.load %arg4[%c0_36, %c15] : memref<1x32xf32, #tpu.memory_space<smem>>
    %177 = vector.broadcast %176 : f32 to vector<8x16xf32>
    %178 = arith.mulf %175, %177 : vector<8x16xf32>
    %179 = arith.addf %168, %178 : vector<8x16xf32>
    %180 = vector.extract_strided_slice %0 {offsets = [0, 16], sizes = [8, 1], strides = [1, 1]} : vector<8x32xf32> to vector<8x1xf32>
    %181 = vector.extract_strided_slice %1 {offsets = [16, 0], sizes = [1, 16], strides = [1, 1]} : vector<32x16xf32> to vector<1x16xf32>
    %182 = vector.broadcast %180 : vector<8x1xf32> to vector<8x16xf32>
    %183 = vector.broadcast %181 : vector<1x16xf32> to vector<8x16xf32>
    %184 = arith.addf %182, %183 : vector<8x16xf32>
    %cst_37 = arith.constant 0.000000e+00 : f32
    %185 = vector.broadcast %cst_37 : f32 to vector<8x16xf32>
    %186 = arith.maximumf %184, %185 : vector<8x16xf32>
    %c0_38 = arith.constant 0 : index
    %c16 = arith.constant 16 : index
    %187 = memref.load %arg4[%c0_38, %c16] : memref<1x32xf32, #tpu.memory_space<smem>>
    %188 = vector.broadcast %187 : f32 to vector<8x16xf32>
    %189 = arith.mulf %186, %188 : vector<8x16xf32>
    %190 = arith.addf %179, %189 : vector<8x16xf32>
    %191 = vector.extract_strided_slice %0 {offsets = [0, 17], sizes = [8, 1], strides = [1, 1]} : vector<8x32xf32> to vector<8x1xf32>
    %192 = vector.extract_strided_slice %1 {offsets = [17, 0], sizes = [1, 16], strides = [1, 1]} : vector<32x16xf32> to vector<1x16xf32>
    %193 = vector.broadcast %191 : vector<8x1xf32> to vector<8x16xf32>
    %194 = vector.broadcast %192 : vector<1x16xf32> to vector<8x16xf32>
    %195 = arith.addf %193, %194 : vector<8x16xf32>
    %cst_39 = arith.constant 0.000000e+00 : f32
    %196 = vector.broadcast %cst_39 : f32 to vector<8x16xf32>
    %197 = arith.maximumf %195, %196 : vector<8x16xf32>
    %c0_40 = arith.constant 0 : index
    %c17 = arith.constant 17 : index
    %198 = memref.load %arg4[%c0_40, %c17] : memref<1x32xf32, #tpu.memory_space<smem>>
    %199 = vector.broadcast %198 : f32 to vector<8x16xf32>
    %200 = arith.mulf %197, %199 : vector<8x16xf32>
    %201 = arith.addf %190, %200 : vector<8x16xf32>
    %202 = vector.extract_strided_slice %0 {offsets = [0, 18], sizes = [8, 1], strides = [1, 1]} : vector<8x32xf32> to vector<8x1xf32>
    %203 = vector.extract_strided_slice %1 {offsets = [18, 0], sizes = [1, 16], strides = [1, 1]} : vector<32x16xf32> to vector<1x16xf32>
    %204 = vector.broadcast %202 : vector<8x1xf32> to vector<8x16xf32>
    %205 = vector.broadcast %203 : vector<1x16xf32> to vector<8x16xf32>
    %206 = arith.addf %204, %205 : vector<8x16xf32>
    %cst_41 = arith.constant 0.000000e+00 : f32
    %207 = vector.broadcast %cst_41 : f32 to vector<8x16xf32>
    %208 = arith.maximumf %206, %207 : vector<8x16xf32>
    %c0_42 = arith.constant 0 : index
    %c18 = arith.constant 18 : index
    %209 = memref.load %arg4[%c0_42, %c18] : memref<1x32xf32, #tpu.memory_space<smem>>
    %210 = vector.broadcast %209 : f32 to vector<8x16xf32>
    %211 = arith.mulf %208, %210 : vector<8x16xf32>
    %212 = arith.addf %201, %211 : vector<8x16xf32>
    %213 = vector.extract_strided_slice %0 {offsets = [0, 19], sizes = [8, 1], strides = [1, 1]} : vector<8x32xf32> to vector<8x1xf32>
    %214 = vector.extract_strided_slice %1 {offsets = [19, 0], sizes = [1, 16], strides = [1, 1]} : vector<32x16xf32> to vector<1x16xf32>
    %215 = vector.broadcast %213 : vector<8x1xf32> to vector<8x16xf32>
    %216 = vector.broadcast %214 : vector<1x16xf32> to vector<8x16xf32>
    %217 = arith.addf %215, %216 : vector<8x16xf32>
    %cst_43 = arith.constant 0.000000e+00 : f32
    %218 = vector.broadcast %cst_43 : f32 to vector<8x16xf32>
    %219 = arith.maximumf %217, %218 : vector<8x16xf32>
    %c0_44 = arith.constant 0 : index
    %c19 = arith.constant 19 : index
    %220 = memref.load %arg4[%c0_44, %c19] : memref<1x32xf32, #tpu.memory_space<smem>>
    %221 = vector.broadcast %220 : f32 to vector<8x16xf32>
    %222 = arith.mulf %219, %221 : vector<8x16xf32>
    %223 = arith.addf %212, %222 : vector<8x16xf32>
    %224 = vector.extract_strided_slice %0 {offsets = [0, 20], sizes = [8, 1], strides = [1, 1]} : vector<8x32xf32> to vector<8x1xf32>
    %225 = vector.extract_strided_slice %1 {offsets = [20, 0], sizes = [1, 16], strides = [1, 1]} : vector<32x16xf32> to vector<1x16xf32>
    %226 = vector.broadcast %224 : vector<8x1xf32> to vector<8x16xf32>
    %227 = vector.broadcast %225 : vector<1x16xf32> to vector<8x16xf32>
    %228 = arith.addf %226, %227 : vector<8x16xf32>
    %cst_45 = arith.constant 0.000000e+00 : f32
    %229 = vector.broadcast %cst_45 : f32 to vector<8x16xf32>
    %230 = arith.maximumf %228, %229 : vector<8x16xf32>
    %c0_46 = arith.constant 0 : index
    %c20 = arith.constant 20 : index
    %231 = memref.load %arg4[%c0_46, %c20] : memref<1x32xf32, #tpu.memory_space<smem>>
    %232 = vector.broadcast %231 : f32 to vector<8x16xf32>
    %233 = arith.mulf %230, %232 : vector<8x16xf32>
    %234 = arith.addf %223, %233 : vector<8x16xf32>
    %235 = vector.extract_strided_slice %0 {offsets = [0, 21], sizes = [8, 1], strides = [1, 1]} : vector<8x32xf32> to vector<8x1xf32>
    %236 = vector.extract_strided_slice %1 {offsets = [21, 0], sizes = [1, 16], strides = [1, 1]} : vector<32x16xf32> to vector<1x16xf32>
    %237 = vector.broadcast %235 : vector<8x1xf32> to vector<8x16xf32>
    %238 = vector.broadcast %236 : vector<1x16xf32> to vector<8x16xf32>
    %239 = arith.addf %237, %238 : vector<8x16xf32>
    %cst_47 = arith.constant 0.000000e+00 : f32
    %240 = vector.broadcast %cst_47 : f32 to vector<8x16xf32>
    %241 = arith.maximumf %239, %240 : vector<8x16xf32>
    %c0_48 = arith.constant 0 : index
    %c21 = arith.constant 21 : index
    %242 = memref.load %arg4[%c0_48, %c21] : memref<1x32xf32, #tpu.memory_space<smem>>
    %243 = vector.broadcast %242 : f32 to vector<8x16xf32>
    %244 = arith.mulf %241, %243 : vector<8x16xf32>
    %245 = arith.addf %234, %244 : vector<8x16xf32>
    %246 = vector.extract_strided_slice %0 {offsets = [0, 22], sizes = [8, 1], strides = [1, 1]} : vector<8x32xf32> to vector<8x1xf32>
    %247 = vector.extract_strided_slice %1 {offsets = [22, 0], sizes = [1, 16], strides = [1, 1]} : vector<32x16xf32> to vector<1x16xf32>
    %248 = vector.broadcast %246 : vector<8x1xf32> to vector<8x16xf32>
    %249 = vector.broadcast %247 : vector<1x16xf32> to vector<8x16xf32>
    %250 = arith.addf %248, %249 : vector<8x16xf32>
    %cst_49 = arith.constant 0.000000e+00 : f32
    %251 = vector.broadcast %cst_49 : f32 to vector<8x16xf32>
    %252 = arith.maximumf %250, %251 : vector<8x16xf32>
    %c0_50 = arith.constant 0 : index
    %c22 = arith.constant 22 : index
    %253 = memref.load %arg4[%c0_50, %c22] : memref<1x32xf32, #tpu.memory_space<smem>>
    %254 = vector.broadcast %253 : f32 to vector<8x16xf32>
    %255 = arith.mulf %252, %254 : vector<8x16xf32>
    %256 = arith.addf %245, %255 : vector<8x16xf32>
    %257 = vector.extract_strided_slice %0 {offsets = [0, 23], sizes = [8, 1], strides = [1, 1]} : vector<8x32xf32> to vector<8x1xf32>
    %258 = vector.extract_strided_slice %1 {offsets = [23, 0], sizes = [1, 16], strides = [1, 1]} : vector<32x16xf32> to vector<1x16xf32>
    %259 = vector.broadcast %257 : vector<8x1xf32> to vector<8x16xf32>
    %260 = vector.broadcast %258 : vector<1x16xf32> to vector<8x16xf32>
    %261 = arith.addf %259, %260 : vector<8x16xf32>
    %cst_51 = arith.constant 0.000000e+00 : f32
    %262 = vector.broadcast %cst_51 : f32 to vector<8x16xf32>
    %263 = arith.maximumf %261, %262 : vector<8x16xf32>
    %c0_52 = arith.constant 0 : index
    %c23 = arith.constant 23 : index
    %264 = memref.load %arg4[%c0_52, %c23] : memref<1x32xf32, #tpu.memory_space<smem>>
    %265 = vector.broadcast %264 : f32 to vector<8x16xf32>
    %266 = arith.mulf %263, %265 : vector<8x16xf32>
    %267 = arith.addf %256, %266 : vector<8x16xf32>
    %268 = vector.extract_strided_slice %0 {offsets = [0, 24], sizes = [8, 1], strides = [1, 1]} : vector<8x32xf32> to vector<8x1xf32>
    %269 = vector.extract_strided_slice %1 {offsets = [24, 0], sizes = [1, 16], strides = [1, 1]} : vector<32x16xf32> to vector<1x16xf32>
    %270 = vector.broadcast %268 : vector<8x1xf32> to vector<8x16xf32>
    %271 = vector.broadcast %269 : vector<1x16xf32> to vector<8x16xf32>
    %272 = arith.addf %270, %271 : vector<8x16xf32>
    %cst_53 = arith.constant 0.000000e+00 : f32
    %273 = vector.broadcast %cst_53 : f32 to vector<8x16xf32>
    %274 = arith.maximumf %272, %273 : vector<8x16xf32>
    %c0_54 = arith.constant 0 : index
    %c24 = arith.constant 24 : index
    %275 = memref.load %arg4[%c0_54, %c24] : memref<1x32xf32, #tpu.memory_space<smem>>
    %276 = vector.broadcast %275 : f32 to vector<8x16xf32>
    %277 = arith.mulf %274, %276 : vector<8x16xf32>
    %278 = arith.addf %267, %277 : vector<8x16xf32>
    %279 = vector.extract_strided_slice %0 {offsets = [0, 25], sizes = [8, 1], strides = [1, 1]} : vector<8x32xf32> to vector<8x1xf32>
    %280 = vector.extract_strided_slice %1 {offsets = [25, 0], sizes = [1, 16], strides = [1, 1]} : vector<32x16xf32> to vector<1x16xf32>
    %281 = vector.broadcast %279 : vector<8x1xf32> to vector<8x16xf32>
    %282 = vector.broadcast %280 : vector<1x16xf32> to vector<8x16xf32>
    %283 = arith.addf %281, %282 : vector<8x16xf32>
    %cst_55 = arith.constant 0.000000e+00 : f32
    %284 = vector.broadcast %cst_55 : f32 to vector<8x16xf32>
    %285 = arith.maximumf %283, %284 : vector<8x16xf32>
    %c0_56 = arith.constant 0 : index
    %c25 = arith.constant 25 : index
    %286 = memref.load %arg4[%c0_56, %c25] : memref<1x32xf32, #tpu.memory_space<smem>>
    %287 = vector.broadcast %286 : f32 to vector<8x16xf32>
    %288 = arith.mulf %285, %287 : vector<8x16xf32>
    %289 = arith.addf %278, %288 : vector<8x16xf32>
    %290 = vector.extract_strided_slice %0 {offsets = [0, 26], sizes = [8, 1], strides = [1, 1]} : vector<8x32xf32> to vector<8x1xf32>
    %291 = vector.extract_strided_slice %1 {offsets = [26, 0], sizes = [1, 16], strides = [1, 1]} : vector<32x16xf32> to vector<1x16xf32>
    %292 = vector.broadcast %290 : vector<8x1xf32> to vector<8x16xf32>
    %293 = vector.broadcast %291 : vector<1x16xf32> to vector<8x16xf32>
    %294 = arith.addf %292, %293 : vector<8x16xf32>
    %cst_57 = arith.constant 0.000000e+00 : f32
    %295 = vector.broadcast %cst_57 : f32 to vector<8x16xf32>
    %296 = arith.maximumf %294, %295 : vector<8x16xf32>
    %c0_58 = arith.constant 0 : index
    %c26 = arith.constant 26 : index
    %297 = memref.load %arg4[%c0_58, %c26] : memref<1x32xf32, #tpu.memory_space<smem>>
    %298 = vector.broadcast %297 : f32 to vector<8x16xf32>
    %299 = arith.mulf %296, %298 : vector<8x16xf32>
    %300 = arith.addf %289, %299 : vector<8x16xf32>
    %301 = vector.extract_strided_slice %0 {offsets = [0, 27], sizes = [8, 1], strides = [1, 1]} : vector<8x32xf32> to vector<8x1xf32>
    %302 = vector.extract_strided_slice %1 {offsets = [27, 0], sizes = [1, 16], strides = [1, 1]} : vector<32x16xf32> to vector<1x16xf32>
    %303 = vector.broadcast %301 : vector<8x1xf32> to vector<8x16xf32>
    %304 = vector.broadcast %302 : vector<1x16xf32> to vector<8x16xf32>
    %305 = arith.addf %303, %304 : vector<8x16xf32>
    %cst_59 = arith.constant 0.000000e+00 : f32
    %306 = vector.broadcast %cst_59 : f32 to vector<8x16xf32>
    %307 = arith.maximumf %305, %306 : vector<8x16xf32>
    %c0_60 = arith.constant 0 : index
    %c27 = arith.constant 27 : index
    %308 = memref.load %arg4[%c0_60, %c27] : memref<1x32xf32, #tpu.memory_space<smem>>
    %309 = vector.broadcast %308 : f32 to vector<8x16xf32>
    %310 = arith.mulf %307, %309 : vector<8x16xf32>
    %311 = arith.addf %300, %310 : vector<8x16xf32>
    %312 = vector.extract_strided_slice %0 {offsets = [0, 28], sizes = [8, 1], strides = [1, 1]} : vector<8x32xf32> to vector<8x1xf32>
    %313 = vector.extract_strided_slice %1 {offsets = [28, 0], sizes = [1, 16], strides = [1, 1]} : vector<32x16xf32> to vector<1x16xf32>
    %314 = vector.broadcast %312 : vector<8x1xf32> to vector<8x16xf32>
    %315 = vector.broadcast %313 : vector<1x16xf32> to vector<8x16xf32>
    %316 = arith.addf %314, %315 : vector<8x16xf32>
    %cst_61 = arith.constant 0.000000e+00 : f32
    %317 = vector.broadcast %cst_61 : f32 to vector<8x16xf32>
    %318 = arith.maximumf %316, %317 : vector<8x16xf32>
    %c0_62 = arith.constant 0 : index
    %c28 = arith.constant 28 : index
    %319 = memref.load %arg4[%c0_62, %c28] : memref<1x32xf32, #tpu.memory_space<smem>>
    %320 = vector.broadcast %319 : f32 to vector<8x16xf32>
    %321 = arith.mulf %318, %320 : vector<8x16xf32>
    %322 = arith.addf %311, %321 : vector<8x16xf32>
    %323 = vector.extract_strided_slice %0 {offsets = [0, 29], sizes = [8, 1], strides = [1, 1]} : vector<8x32xf32> to vector<8x1xf32>
    %324 = vector.extract_strided_slice %1 {offsets = [29, 0], sizes = [1, 16], strides = [1, 1]} : vector<32x16xf32> to vector<1x16xf32>
    %325 = vector.broadcast %323 : vector<8x1xf32> to vector<8x16xf32>
    %326 = vector.broadcast %324 : vector<1x16xf32> to vector<8x16xf32>
    %327 = arith.addf %325, %326 : vector<8x16xf32>
    %cst_63 = arith.constant 0.000000e+00 : f32
    %328 = vector.broadcast %cst_63 : f32 to vector<8x16xf32>
    %329 = arith.maximumf %327, %328 : vector<8x16xf32>
    %c0_64 = arith.constant 0 : index
    %c29 = arith.constant 29 : index
    %330 = memref.load %arg4[%c0_64, %c29] : memref<1x32xf32, #tpu.memory_space<smem>>
    %331 = vector.broadcast %330 : f32 to vector<8x16xf32>
    %332 = arith.mulf %329, %331 : vector<8x16xf32>
    %333 = arith.addf %322, %332 : vector<8x16xf32>
    %334 = vector.extract_strided_slice %0 {offsets = [0, 30], sizes = [8, 1], strides = [1, 1]} : vector<8x32xf32> to vector<8x1xf32>
    %335 = vector.extract_strided_slice %1 {offsets = [30, 0], sizes = [1, 16], strides = [1, 1]} : vector<32x16xf32> to vector<1x16xf32>
    %336 = vector.broadcast %334 : vector<8x1xf32> to vector<8x16xf32>
    %337 = vector.broadcast %335 : vector<1x16xf32> to vector<8x16xf32>
    %338 = arith.addf %336, %337 : vector<8x16xf32>
    %cst_65 = arith.constant 0.000000e+00 : f32
    %339 = vector.broadcast %cst_65 : f32 to vector<8x16xf32>
    %340 = arith.maximumf %338, %339 : vector<8x16xf32>
    %c0_66 = arith.constant 0 : index
    %c30 = arith.constant 30 : index
    %341 = memref.load %arg4[%c0_66, %c30] : memref<1x32xf32, #tpu.memory_space<smem>>
    %342 = vector.broadcast %341 : f32 to vector<8x16xf32>
    %343 = arith.mulf %340, %342 : vector<8x16xf32>
    %344 = arith.addf %333, %343 : vector<8x16xf32>
    %345 = vector.extract_strided_slice %0 {offsets = [0, 31], sizes = [8, 1], strides = [1, 1]} : vector<8x32xf32> to vector<8x1xf32>
    %346 = vector.extract_strided_slice %1 {offsets = [31, 0], sizes = [1, 16], strides = [1, 1]} : vector<32x16xf32> to vector<1x16xf32>
    %347 = vector.broadcast %345 : vector<8x1xf32> to vector<8x16xf32>
    %348 = vector.broadcast %346 : vector<1x16xf32> to vector<8x16xf32>
    %349 = arith.addf %347, %348 : vector<8x16xf32>
    %cst_67 = arith.constant 0.000000e+00 : f32
    %350 = vector.broadcast %cst_67 : f32 to vector<8x16xf32>
    %351 = arith.maximumf %349, %350 : vector<8x16xf32>
    %c0_68 = arith.constant 0 : index
    %c31 = arith.constant 31 : index
    %352 = memref.load %arg4[%c0_68, %c31] : memref<1x32xf32, #tpu.memory_space<smem>>
    %353 = vector.broadcast %352 : f32 to vector<8x16xf32>
    %354 = arith.mulf %351, %353 : vector<8x16xf32>
    %355 = arith.addf %344, %354 : vector<8x16xf32>
    %356 = arith.negf %355 : vector<8x16xf32>
    %357 = math.exp %356 : vector<8x16xf32>
    %cst_69 = arith.constant 1.000000e+00 : f32
    %358 = vector.broadcast %cst_69 : f32 to vector<8x16xf32>
    %359 = arith.addf %358, %357 : vector<8x16xf32>
    %360 = arith.divf %358, %359 : vector<8x16xf32>
    %c0_70 = arith.constant 0 : index
    %c0_71 = arith.constant 0 : index
    %361 = vector.load %arg6[%c0_70, %c0_71] : memref<8x16xf32, #tpu.memory_space<vmem>>, vector<8x16xf32>
    tpu.vector_store %arg6[%c0_70, %c0_71], %360 {strides = array<i32>} : memref<8x16xf32, #tpu.memory_space<vmem>>, vector<8x16xf32>,
    %c0_i32 = arith.constant 0 : i32
    %362 = arith.cmpi eq, %arg1, %c0_i32 : i32
    %363 = arith.extui %362 : i1 to i32
    %c0_i32_72 = arith.constant 0 : i32
    %364 = arith.cmpi ne, %363, %c0_i32_72 : i32
    scf.if %364 {
      %cst_78 = arith.constant 0.000000e+00 : f32
      %370 = vector.broadcast %cst_78 : f32 to vector<8x1xf32>
      %c0_79 = arith.constant 0 : index
      %c0_80 = arith.constant 0 : index
      %371 = vector.load %arg7[%c0_79, %c0_80] : memref<8x1xf32, #tpu.memory_space<vmem>>, vector<8x1xf32>
      tpu.vector_store %arg7[%c0_79, %c0_80], %370 {strides = array<i32>} : memref<8x1xf32, #tpu.memory_space<vmem>>, vector<8x1xf32>,
    } else {
    }
    %c0_73 = arith.constant 0 : index
    %c0_74 = arith.constant 0 : index
    %365 = vector.load %arg7[%c0_73, %c0_74] : memref<8x1xf32, #tpu.memory_space<vmem>>, vector<8x1xf32>
    %cst_75 = arith.constant dense<0.000000e+00> : vector<8xf32>
    %366 = vector.multi_reduction <add>, %360, %cst_75 [1] : vector<8x16xf32> to vector<8xf32>
    %367 = vector.shape_cast %366 : vector<8xf32> to vector<8x1xf32>
    %368 = arith.addf %365, %367 : vector<8x1xf32>
    %c0_76 = arith.constant 0 : index
    %c0_77 = arith.constant 0 : index
    %369 = vector.load %arg7[%c0_76, %c0_77] : memref<8x1xf32, #tpu.memory_space<vmem>>, vector<8x1xf32>
    tpu.vector_store %arg7[%c0_76, %c0_77], %368 {strides = array<i32>} : memref<8x1xf32, #tpu.memory_space<vmem>>, vector<8x1xf32>,
    return
  }
  func.func @transform_0(%arg0: i32, %arg1: i32) -> (i32, i32) {
    %c0_i32 = arith.constant 0 : i32
    %c0_i32_0 = arith.constant 0 : i32
    return %arg0, %c0_i32 : i32, i32
  }
  func.func @transform_1(%arg0: i32, %arg1: i32) -> (i32, i32) {
    %c0_i32 = arith.constant 0 : i32
    %c0_i32_0 = arith.constant 0 : i32
    return %c0_i32, %arg1 : i32, i32
  }
  func.func @transform_2(%arg0: i32, %arg1: i32) -> (i32, i32) {
    %c0_i32 = arith.constant 0 : i32
    %c0_i32_0 = arith.constant 0 : i32
    %c0_i32_1 = arith.constant 0 : i32
    return %c0_i32, %c0_i32_0 : i32, i32
  }
  func.func @transform_3(%arg0: i32, %arg1: i32) -> (i32, i32) {
    %c0_i32 = arith.constant 0 : i32
    %c0_i32_0 = arith.constant 0 : i32
    %c0_i32_1 = arith.constant 0 : i32
    return %c0_i32, %c0_i32_0 : i32, i32
  }
  func.func @transform_4(%arg0: i32, %arg1: i32) -> (i32, i32) {
    %c0_i32 = arith.constant 0 : i32
    return %arg0, %arg1 : i32, i32
  }
  func.func @transform_5(%arg0: i32, %arg1: i32) -> (i32, i32) {
    %c0_i32 = arith.constant 0 : i32
    %c0_i32_0 = arith.constant 0 : i32
    return %arg0, %c0_i32 : i32, i32
  }
}

</mosaic_0001>

<bundles_post_ra>
// kernel: multi_gcn_relation_forward.3
= control target key start
LH: loop header
LB: loop body
LE: loop exit
PB: predicated region body
PF: predicated region fallthrough
CT: control target
= control target key end

     0   :  { %vm35_vm0 = vcmask 261120   ;;  %vm225_vm1 = vcmask 130048   ;;  %vm117_vm2 = vcmask 523264   ;;  %s408_s1 = inlined_call_operand.vmem [shape: f32[32,16], index: 1, kind: input, shape index: {}]   ;;  %s409_s2 = inlined_call_operand.vmem [shape: f32[32,64], index: 2, kind: input, shape index: {}]   ;;  %s410_s4 = inlined_call_operand.vmem [shape: f32[32,32], index: 4, kind: input, shape index: {}]   ;;  %s411_s0 = inlined_call_operand.vmem [shape: f32[16,32], index: 0, kind: input, shape index: {}]   ;;  %s412_s3 = inlined_call_operand.vmem [shape: f32[1,64], index: 3, kind: input, shape index: {}]   ;;  %s413_s6 = inlined_call_operand.vmem [shape: f32[32,16], index: 6, kind: output, shape index: {1}]   ;;  %s414_s5 = inlined_call_operand.vmem [shape: f32[16,64], index: 5, kind: output, shape index: {0}]  }
   0x1   :  { %v124_v0 = vld [vmem:[%s408_s1] sm:$0xff]  ;;  %v125_v1 = vld [vmem:[%s408_s1 + $0x8] sm:$0xff]  ;;  %v126_v5 = vld [vmem:[%s408_s1 + $0x10] sm:$0xff] }
   0x2   :  { %v24_v2 = vld [vmem:[%s409_s2] sm:$0xff]  ;;  %v292_v3 = vpack.c.bf16 %v125_v1, %v124_v0  ;;  %v25_v4 = vld [vmem:[%s409_s2 + $0x8] sm:$0xff]  ;;  %v127_v6 = vld [vmem:[%s408_s1 + $0x18] sm:$0xff] }
   0x3   :  { %v284_v7 = vpack.c.bf16 %v25_v4, %v24_v2  ;;  %v296_v8 = vpack.c.bf16 %v127_v6, %v126_v5  ;;  %v26_v9 = vld [vmem:[%s409_s2 + $0x10] sm:$0xff]  ;;  %v27_v10 = vld [vmem:[%s409_s2 + $0x18] sm:$0xff]  ;;  %v120_v11 = vld [vmem:[%s410_s4] sm:$0xff] }
   0x4   :  { %293 = vmatprep.subr.bf16.mxu1 %v292_v3  ;;  %v288_v12 = vpack.c.bf16 %v27_v10, %v26_v9  ;;  %278 = vmatprep.mubr.msk.f32.mxu1 %vm35_vm0, %v120_v11  ;;  %v22_v13 = vld [vmem:[%s411_s0] sm:$0xff]  ;;  %v121_v14 = vld [vmem:[%s410_s4 + $0x8] sm:$0xff]  ;;  %v122_v16 = vld [vmem:[%s410_s4 + $0x10] sm:$0xff] }
   0x5   :  { %285 = vmatprep.subr.bf16.mxu0 %v284_v7  ;;  %295 = vmatpush3.bf16.msra.mxu1 %v292_v3  ;;  %v23_v15 = vld [vmem:[%s411_s0 + $0x8] sm:$0xff]  ;;  %v123_v17 = vld [vmem:[%s410_s4 + $0x18] sm:$0xff]  ;;  %v238_v18 = vld [vmem:[%s412_s3] ss:$0 sm:$0xff] }
   0x6   :  { %287 = vmatpush3.bf16.msra.mxu0 %v284_v7  ;;  %297 = vmatprep.subr.bf16.mxu1 %v296_v8 }
   0x7   :  { %289 = vmatprep.subr.bf16.mxu0 %v288_v12  ;;  %267 = vmatprep.mubr.msk.f32.mxu0 %vm35_vm0, %v22_v13 }
   0x9   :  { %299 = vmatpush3.bf16.msra.mxu1 %v296_v8 }
   0xa   :  { %291 = vmatpush3.bf16.msra.mxu0 %v288_v12 }
   0xc   :  { %279 = vmatmul.mubr.msk.f32.vlgmr.msra.gmra.mrb[0].mxu1 %vm35_vm0, %v121_v14 }
   0xd   :  { %268 = vmatmul.mubr.msk.f32.vlgmr.msra.gmra.mrb[0].mxu0 %vm35_vm0, %v23_v15  ;;  %281 = vmatprep.mubr.msk.f32.mxu1 %vm35_vm0, %v122_v16 }
  0x10   :  { %282 = vmatmul.mubr.msk.f32.gmra.mrb[2].mxu1 %vm35_vm0, %v123_v17 }
  0xdf   :  { %v280_v19 = vpop.f32.mrb[0].mxu1 }
  0xe0   :  { %227 = vst.msk [vmem:[%s413_s6 + $0x8] sm:$0xff] %vm225_vm1, %v280_v19  ;;  %v269_v20 = vpop.f32.mrb[0].mxu0  ;;  %v206_v21 = vpop.f32.mrb[1].mxu1 }
  0xe1   :  { %v114_v22 = vadd.f32 %v269_v20, %v238_v18  ;;  %226 = vst.msk [vmem:[%s413_s6] sm:$0xff] %vm225_vm1, %v206_v21  ;;  %v108_v23 = vpop.f32.mrb[1].mxu0 }
  0xe2   :  { %v109_v24 = vadd.f32 %v238_v18, %v108_v23 }
  0xe3   :  { %119 = vst.msk [vmem:[%s414_s5 + $0x8] sm:$0xff] %vm117_vm2, %v114_v22  ;;  %v283_v25 = vpop.f32.mrb[2].mxu1 }
  0xe4   :  { %118 = vst.msk [vmem:[%s414_s5] sm:$0xff] %vm117_vm2, %v109_v24  ;;  %v216_v26 = vpop.f32.mrb[3].mxu1 }
  0xe5   :  { %229 = vst.msk [vmem:[%s413_s6 + $0x18] sm:$0xff] %vm225_vm1, %v283_v25  ;;  %228 = vst.msk [vmem:[%s413_s6 + $0x10] sm:$0xff] %vm225_vm1, %v216_v26 }

// kernel: multi_gcn_relation_forward.5
= control target key start
LH: loop header
LB: loop body
LE: loop exit
PB: predicated region body
PF: predicated region fallthrough
CT: control target
= control target key end

     0   :  { %13 = vsyncpa [#allocation3], 0  ;;  %s935_s0 = inlined_call_operand.vmem [shape: f32[16,16], index: 0, kind: input, shape index: {}]   ;;  %s936_s1 = inlined_call_operand.vmem [shape: f32[1,16], index: 1, kind: input, shape index: {}]   ;;  %s937_s2 = inlined_call_operand.vmem [shape: f32[16,64], index: 2, kind: input, shape index: {}]   ;;  %s938_s3 = inlined_call_operand.vmem [shape: f32[1,32], index: 3, kind: input, shape index: {}]   ;;  %s939_s4 = inlined_call_operand.vmem [shape: f32[1,32], index: 4, kind: input, shape index: {}]   ;;  %s940_s5 = inlined_call_operand.vmem [shape: f32[1,32], index: 5, kind: input, shape index: {}]   ;;  %s941_s6 = inlined_call_operand.hbm [shape: f32[16,32], index: 6, kind: output, shape index: {0}]   ;;  %s942_s7 = inlined_call_operand.hbm [shape: f32[16,16], index: 7, kind: output, shape index: {1}]  }
   0x1   :  { %15 = vsyncpa [#allocation3 + $0x1], 0 }
   0x2   :  { %16 = vsyncpa [#allocation5], 0 }
   0x3   :  { %18 = vsyncpa [#allocation5 + $0x1], 0  ;;  %s778_s24 = smov 0   ;;  %s780_s25 = smov 0  }
   0x4   :  { %s782_s26 = smov 0   ;;  %s784_s27 = smov 0  }
   0x5 LB: > { %s799_s28 = sadd.s32 4294967295, %s730_s27   ;;  %s547_s29 = sadd.s32 4294967294, %s730_s27   ;;  %s730_s27 = sphi %s784_s27, %s948_s27   ;;  %s726_s26 = sphi %s782_s26, %s947_s26   ;;  %s722_s25 = sphi %s780_s25, %s946_s25   ;;  %s718_s24 = sphi %s778_s24, %s945_s24  }
   0x6   : > { %s803_s30 = sadd.s32 1, %s730_s27   ;;  %s162_s8 = sadd.s32 1, %s726_s26 }
   0x7   : > { %s159_s9 = ssub.s32 %s730_s27, %s803_s30  ;;  %p172_p0 = scmp.ne.s32.totalorder %s726_s26, %s722_s25 }
   0x8   : > { %p160_p1 = scmp.eq.s32.totalorder %s159_s9, 0  ;;  %p173_p2 = scmp.eq.s32.totalorder %s799_s28, 1 }
   0x9   : > { %p178_p3 = scmp.ne.s32.totalorder %s722_s25, %s718_s24  ;;  %p179_p4 = scmp.eq.s32.totalorder %s547_s29, 1 }
   0xa   : > { %s814_s10 = scalar_select %p160_p1, %s726_s26, %s162_s8  }
   0xb   : > { %p816_p5 = por %p173_p2, %p172_p0  ;;  %p820_p6 = por %p179_p4, %p178_p3 }
   0xc   : > { %p550_p7 = scmp.ge.s32.totalorder %s730_s27, 1  ;;  %p245_p8 = scmp.lt.s32.totalorder %s730_s27, 3 }
   0xe   : > { %p246_p9 = pnand %p550_p7, %p245_p8 }
   0xf   : > { %p281_p10 = scmp.lt.s32.totalorder (!%p246_p9), %s799_s28, 1  ;;  %vm287_vm0 = vcmask (!%p246_p9), 130048   ;;  %v314_v2 = vld [vmem:[%s937_s2] sm:$0xff] (!%p246_p9)  ;;  %v315_v3 = vld [vmem:[%s937_s2 + $0x8] sm:$0xff] (!%p246_p9)  ;;  %v296_v4 = vlaneseq (!%p246_p9)  ;;  %v732_v6 = vmov (!%p246_p9), 0.0|0.0   ;;  %s554_s22 = sshll.u32 (!%p246_p9), %s799_s28, 3 }
  0x10   : > { %249 = sbr.rel (%p246_p9) target bundleno = 422 (0x1a6), region = 44  ;;  %v627_v5 = vpack.i.bf16 (!%p246_p9), %v315_v3, %v314_v2  ;;  %576 = vmatprep.subr.bf16.mxu0 (!%p246_p9), %v732_v6  ;;  %v298_v8 = vstv (!%p246_p9), %s554_s22  ;;  %s733_s23 = smov (!%p246_p9), 96   ;;  %v734_v11 = vmov (!%p246_p9), 0.0   ;;  %vm735_vm2 = vmmov (!%p246_p9), 0   ;;  %v293_v14 = vld [vmem:[%s936_s1] sm:$0x1] (!%p246_p9) }
  0x11   : > { %v297_v7 = vshrl.u32 (!%p246_p9), %v296_v4, 7  ;;  %v301_v10 = vand.u32 (!%p246_p9), 127, %v296_v4  ;;  %573 = vmatprep.mubr.msk.f32.mxu0 (!%p246_p9), %vm735_vm2, %v734_v11  ;;  %v294_v15 = vadd.f32 (!%p246_p9), 2.0, %v293_v14  ;;  %s843_s9 = sand.u32 (!%p246_p9), 1, %s722_s25   ;;  %s562_s15 = sshll.u32 (!%p246_p9), %s799_s28, 7 }
  0x12   : > { %s856_s18 = scalar_lea.hbm (!%p246_p9), %s942_s7, %s562_s15  ;;  %s430_s20 = scalar_lea.sflag (!%p246_p9), [#allocation5], %s843_s9 }
  0x13   : > { %v299_v9 = vadd.s32 (!%p246_p9), %v298_v8, %v297_v7  ;;  %632 = vrsqrt.f32 (!%p246_p9), %v294_v15  ;;  %v310_v22 = vsub.s32 (!%p246_p9), 0, %v297_v7  ;;  %s736_s22 = smov (!%p246_p9), [#allocation4]  }
  0x15   : > { %vm302_vm1 = vcmp.eq.s32.totalorder (!%p246_p9), %v299_v9, %v301_v10 }
  0x16   : > { %v555_v12 = vsel (!%p246_p9), %vm302_vm1, 1.0, %v734_v11 }
  0x17   : > { %s282_s13 = scalar_select %p281_p10, %s799_s28, 1 }
  0x19   : > { %s553_s14 = sshll.u32 %s282_s13, 3  ;;  %s551_s13 = sshll.u32 %s843_s9, 3 }
  0x1a   : > { %s284_s17 = scalar_lea.vmem %s935_s0, %s553_s14  ;;  %s280_s14 = scalar_lea.vmem [#allocation4], %s551_s13 }
  0x1b   : > { %v285_v0 = vld [vmem:[%s284_s17] sm:$0xff]  ;;  %s456_s19 = sshll.u32 %s280_s14, 4  ;;  %s457_s19 = int_to_ptr.vmem [resolvable:$true] %s456_s19 }
  0x1c   : > { %v288_v1 = vsel %vm287_vm0, %v285_v0, 0.0  ;;  %v305_v13 = vadd.f32 %v555_v12, %v285_v0  ;;  %s636_s21 = scalar_lea.vmem %s457_s19, 128 }
  0x1d   : > { %289 = vadd.xlane.f32.xlu0 %v288_v1  ;;  %v633_v23 = vpop.eup %632  ;;  %p637_p11 = scmp.ne.s32.totalorder %s457_s19, %s636_s21 }
  0x1e   : > { %v311_v24 = vrot.slane %v633_v23, %v310_v22 }
  0x1f   : > { %p638_p12 = pnand %p637_p11, %p816_p5 }
  0x21   : > { %p639_p13 = pneg %p638_p12 }
  0x33   : > { %628 = vrot.lane.b32.xlu0 %v627_v5, %s733_s23  ;;  %s640_s23 = sshll.u32 %s736_s22, 4  ;;  %s641_s23 = int_to_ptr.vmem [resolvable:$false] %s640_s23 }
  0x34   : > { %s642_s29 = scalar_lea.vmem %s641_s23, 256  ;;  %p643_p0 = scmp.lt.s32.totalorder %s457_s19, %s641_s23 }
  0x35   : > { %p644_p1 = scmp.lt.s32.totalorder %s642_s29, %s636_s21 }
  0x37   : > { %p645_p2 = por %p644_p1, %p643_p0 }
  0x39   : > { %p646_p3 = pnand %p645_p2, %p639_p13 }
  0xaa   : > { %v290_v16 = vpop.xlane.xlu0 %289 }
  0xab   : > { %v291_v17 = vadd.f32 2.0, %v290_v16 }
  0xad   : > { %634 = vrsqrt.f32 %v291_v17 }
  0xae   : > { %v629_v18 = vpop.permute.xlu0 %628 }
  0xaf   : > { %v631_v19 = vunpack.i.h.bf16 %v629_v18  ;;  %v630_v20 = vunpack.i.l.bf16 %v629_v18 }
  0xb1   : > { %v577_v21 = vpack.c.bf16 %v631_v19, %v630_v20 }
  0xb3   : > { %578 = vmatpush3.bf16.msra.mxu0 %v577_v21 }
  0xb7   : > { %v635_v25 = vpop.eup %634 }
  0xb8   : > { %v306_v26 = vmul.f32 %v635_v25, %v305_v13 }
  0xba   : > { %v313_v27 = vmul.f32 %v311_v24, %v306_v26 }
  0xbc   : > { %574 = vmatmul.mubr.msk.f32.vlgmr.msra.gmra.mrb[0].mxu0 %vm287_vm0, %v313_v27  ;;  %423 = vst.msk [vmem:[%s280_s14] sm:$0xff] %vm287_vm0, %v313_v27 }
  0xbd   : > { %649 = shalt.err (!%p646_p3)
}
  0xbe   : > { %s650_s8 = scalar_lea.hbm %s856_s18, 128  ;;  %s654_s17 = scalar_lea.hbm %s942_s7, 256 }
  0xbf   : > { %p651_p4 = scmp.ne.s32.totalorder %s856_s18, %s650_s8  ;;  %p655_p9 = scmp.lt.u32.totalorder %s856_s18, %s942_s7 }
  0xc0   : > { %p656_p10 = scmp.lt.u32.totalorder %s654_s17, %s650_s8  ;;  %p658_p12 = scmp.lt.u32.totalorder %s650_s8, %s856_s18 }
  0xc1   : > { %p652_p7 = pnand %p651_p4, %p816_p5 }
  0xc2   : > { %p657_p11 = por %p656_p10, %p655_p9 }
  0xc3   : > { %p653_p8 = pneg %p652_p7 }
  0xc4   : > { %p659_p13 = por %p658_p12, %p657_p11 }
  0xc6   : > { %p660_p0 = pnand %p659_p13, %p653_p8 }
  0xc8   : > { %663 = shalt.err (!%p660_p0)
}
  0xc9   : > { %580 = dma.vmem_to_hbm [thread:$0]  (%p816_p5), %s457_s19, 128, %s856_s18, %s430_s20   ;;  %v556_v28 = vld [vmem:[%s938_s3] ss:$0 sm:$0xff]  ;;  %vm421_vm3 = vcmask 261120  }
  0xca   : > { %v558_v30 = vld [vmem:[%s939_s4] ss:$0 sm:$0xff]  ;;  %s273_s18 = scalar_lea.vmem [#allocation2], %s551_s13  ;;  %s892_s23 = scalar_lea.hbm %s941_s6, %s562_s15 }
  0xcb   : > { %v559_v33 = vld [vmem:[%s940_s5] ss:$0 sm:$0xff]  ;;  %s443_s19 = sshll.u32 %s273_s18, 4  ;;  %s425_s21 = scalar_lea.sflag [#allocation3], %s843_s9  ;;  %s894_s19 = int_to_ptr.vmem [resolvable:$true] %s443_s19 }
  0xcc   : > { %s664_s29 = scalar_lea.vmem %s894_s19, 128  ;;  %s737_s13 = smov [#allocation2]  }
  0xcd   : > { %p665_p1 = scmp.ne.s32.totalorder %s894_s19, %s664_s29  ;;  %s668_s14 = sshll.u32 %s737_s13, 4  ;;  %s669_s14 = int_to_ptr.vmem [resolvable:$false] %s668_s14 }
  0xce   : > { %s670_s28 = scalar_lea.vmem %s669_s14, 256  ;;  %p671_p4 = scmp.lt.s32.totalorder %s894_s19, %s669_s14 }
  0xcf   : > { %p666_p2 = pnand %p665_p1, %p816_p5  ;;  %p672_p7 = scmp.lt.s32.totalorder %s670_s28, %s664_s29 }
  0xd1   : > { %p667_p3 = pneg %p666_p2  ;;  %p673_p8 = por %p672_p7, %p671_p4 }
  0xd3   : > { %p674_p9 = pnand %p673_p8, %p667_p3 }
 0x18f   : > { %v400_v29 = vpop.f32.mrb[0].mxu0 }
 0x190   : > { %v401_v31 = vadd.f32 %v556_v28, %v400_v29  ;;  %v575_v32 = vpop.f32.mrb[1].mxu0 }
 0x192   : > { %v411_v34 = vmul.f32 %v558_v30, %v401_v31 }
 0x194   : > { %v419_v35 = vadd.f32 %v559_v33, %v411_v34 }
 0x196   : > { %v420_v36 = vmax.f32 %v419_v35, 0.0 }
 0x198   : > { %422 = vst.msk [vmem:[%s273_s18] sm:$0xff] %vm421_vm3, %v420_v36 }
 0x199   : > { %677 = shalt.err (!%p674_p9)
}
 0x19a   : > { %s678_s9 = scalar_lea.hbm %s892_s23, 128  ;;  %s682_s8 = scalar_lea.hbm %s941_s6, 256 }
 0x19b   : > { %p679_p10 = scmp.ne.s32.totalorder %s892_s23, %s678_s9  ;;  %p683_p13 = scmp.lt.u32.totalorder %s892_s23, %s941_s6 }
 0x19c   : > { %p684_p0 = scmp.lt.u32.totalorder %s682_s8, %s678_s9  ;;  %p686_p2 = scmp.lt.u32.totalorder %s678_s9, %s892_s23 }
 0x19d   : > { %p680_p11 = pnand %p679_p10, %p816_p5 }
 0x19e   : > { %p685_p1 = por %p684_p0, %p683_p13 }
 0x19f   : > { %p681_p12 = pneg %p680_p11 }
 0x1a0   : > { %p687_p3 = por %p686_p2, %p685_p1 }
 0x1a2   : > { %p688_p4 = pnand %p687_p3, %p681_p12 }
 0x1a4   : > { %691 = shalt.err (!%p688_p4)
}
 0x1a5   : > { %579 = dma.vmem_to_hbm [thread:$0]  (%p816_p5), %s894_s19, 128, %s892_s23, %s425_s21  }
 0x1a6 PF: > { %p590_p7 = scmp.ge.s32.totalorder %s730_s27, 2  ;;  %s468_s20 = sand.u32 1, %s718_s24  }
 0x1a7   : > { %s469_s22 = scalar_lea.sflag [#allocation3], %s468_s20 }
 0x1a8   : > { %p584_p8 = pnand %p590_p7, %p820_p6 }
 0x1aa   : > { %709 = dma.done.wait (!%p584_p8), %s469_s22, 128  }
 0x1ab   : > { %711 = vsyncadd (!%p584_p8), %s469_s22, 4294967168  ;;  %s478_s29 = scalar_lea.sflag [#allocation5], %s468_s20 }
 0x1ac   : > { %713 = dma.done.wait (!%p584_p8), %s478_s29, 128  }
 0x1ad   : > { %715 = vsyncadd (!%p584_p8), %s478_s29, 4294967168  ;;  %p21_p5 = scmp.ge.s32.totalorder %s803_s30, 4   ;;  %s945_s24 = smov %s722_s25 }
 0x1ae   : > { %s946_s25 = smov %s726_s26  ;;  %s947_s26 = smov %s814_s10 }
 0x1af   : > { %s948_s27 = smov %s803_s30  ;;  %23 = sbr.rel (!%p21_p5) target bundleno = 5 (0x5), region = 96 }
 0x1b6   :  { %483 = vsyncpa [#allocation3], 1 }
 0x1b7   :  { %485 = vsyncpa [#allocation3 + $0x1], 1 }
 0x1b8   :  { %486 = vsyncpa [#allocation5], 1 }
 0x1b9   :  { %488 = vsyncpa [#allocation5 + $0x1], 1 }

// kernel: multi_gcn_relation_forward.4
= control target key start
LH: loop header
LB: loop body
LE: loop exit
PB: predicated region body
PF: predicated region fallthrough
CT: control target
= control target key end

     0   :  { %s1379_s0 = inlined_call_operand.vmem [shape: f32[16,64], index: 0, kind: input, shape index: {}]   ;;  %s1380_s1 = inlined_call_operand.vmem [shape: f32[32,16], index: 1, kind: input, shape index: {}]   ;;  %s1381_s2 = inlined_call_operand.vmem [shape: f32[1,32], index: 2, kind: input, shape index: {}]   ;;  %s1382_s3 = inlined_call_operand.<no memory space> [shape: f32[1,1], index: 3, kind: input, shape index: {}]   ;;  %s1383_s4 = inlined_call_operand.vmem [shape: f32[16,16], index: 4, kind: output, shape index: {0}]   ;;  %s1384_s5 = inlined_call_operand.vmem [shape: f32[16,1], index: 5, kind: output, shape index: {1}]  }
   0x1   :  { %11 = sst [smem:[#allocation2]] %s1382_s3 }
   0x2   :  { %12 = vsyncpa [#allocation4], 0  ;;  %s1150_s20 = smov 0   ;;  %s1152_s21 = smov 0  }
   0x3   :  { %s1154_s22 = smov 0  }
   0x4 LB: > { %s890_s3 = sadd.s32 4294967295, %s1081_s22   ;;  %s30_s23 = sadd.s32 1, %s1077_s21  ;;  %s1081_s22 = sphi %s1154_s22, %s18_s22   ;;  %s1077_s21 = sphi %s1152_s21, %s1388_s21   ;;  %s1073_s20 = sphi %s1150_s20, %s1387_s20  }
   0x5   : > { %p32_p0 = scmp.ge.s32.totalorder %s30_s23, 2  ;;  %p892_p1 = scmp.ge.s32.totalorder %s1081_s22, 1 }
   0x6   : > { %p183_p2 = scmp.lt.s32.totalorder %s1081_s22, 3  ;;  %p1175_p4 = scmp.eq.s32.totalorder %s890_s3, 0 }
   0x7   : > { %s1390_s23 = smov (%p32_p0, %s30_s23), 0  ;;  %s203_s28 = sshll.u32 %s1381_s2, 4  ;;  %s204_s28 = int_to_ptr.vmem [resolvable:$true] %s203_s28 }
   0x8   : > { %p1171_p3 = pnand %p892_p1, %p183_p2  ;;  %s1040_s29 = scalar_lea.vmem %s204_s28, 16 }
   0x9   : > { %p1041_p7 = scmp.ne.s32.totalorder %s204_s28, %s1040_s29  ;;  %p1048_p11 = scmp.lt.s32.totalorder %s204_s28, %s204_s28 }
   0xa   : > { %p939_p5 = pneg %p1171_p3  ;;  %p1049_p12 = scmp.lt.s32.totalorder %s1040_s29, %s1040_s29 }
   0xc   : > { %p940_p6 = pnand %p1175_p4, %p939_p5  ;;  %p1050_p13 = por %p1049_p12, %p1048_p11 }
   0xe   : > { %p1042_p8 = pneg %p940_p6 }
  0x10   : > { %p1043_p9 = pnand %p1042_p8, %p1041_p7 }
  0x12   : > { %p1044_p10 = pneg %p1043_p9 }
  0x14   : > { %p1051_p0 = pnand %p1050_p13, %p1044_p10 }
  0x16   : > { %1054 = shalt.err (!%p1051_p0)
}
  0x17   : > { %s1083_s30 = smov [#allocation3]   ;;  %226 = sbr.rel (%p1171_p3) target bundleno = 447 (0x1bf), region = 36 }
  0x18   : > { %942 = dma.vmem_to_smem (!%p940_p6), %s204_s28, 16, %s1083_s30, [#allocation4]  }
  0x1e   : > { %1068 = dma.done.wait (%p1175_p4), [#allocation4], 16  }
  0x1f   : > { %1070 = vsyncadd (%p1175_p4), [#allocation4], 4294967280 }
  0x20   : > { %232 = sfence }
  0x21   : > { %p264_p1 = scmp.lt.s32.totalorder %s1073_s20, 1  ;;  %v1084_v0 = vmov 2   ;;  %v1085_v1 = vmov 0   ;;  %v1086_v3 = vmov 3   ;;  %v1087_v4 = vmov 1   ;;  %s301_s10 = sld [smem:[#allocation3]] }
  0x22   : > { %1005 = vset.pattern.permute.xlu1 %v1084_v0  ;;  %1003 = vset.pattern.permute.xlu0 %v1085_v1  ;;  %v1088_v5 = vmov 4   ;;  %v1089_v6 = vmov 5   ;;  %v1090_v7 = vmov 6   ;;  %v1091_v8 = vmov 8   ;;  %v1241_v37 = vld [vmem:[%s1380_s1] sm:$0xff]  ;;  %s1243_s13 = sld [smem:[#allocation2]] }
  0x23   : > { %s1392_s20 = smov (!%p264_p1, %s1073_s20), 1  ;;  %v1092_v9 = vmov 7   ;;  %v1093_v10 = vmov 11   ;;  %v1094_v11 = vmov 9   ;;  %v1095_v12 = vmov 14   ;;  %s1253_s14 = sld [smem:[#allocation3 + $0x1]] }
  0x24   : > { %s1194_s6 = sshll.u32 %s1392_s20, 3  ;;  %v1096_v13 = vmov 10   ;;  %v1097_v14 = vmov 17   ;;  %v1098_v15 = vmov 12   ;;  %v1099_v16 = vmov 20   ;;  %s1255_s15 = sld [smem:[#allocation3 + $0x2]] }
  0x25   : > { %s267_s9 = scalar_lea.vmem %s1379_s0, %s1194_s6  ;;  %v1100_v17 = vmov 13   ;;  %v1101_v18 = vmov 23   ;;  %v1102_v19 = vmov 15   ;;  %v1103_v20 = vmov 26   ;;  %s1263_s16 = sld [smem:[#allocation3 + $0x3]] }
  0x26   : > { %v1200_v2 = vld [vmem:[%s267_s9] sm:$0xff]  ;;  %v1104_v21 = vmov 16   ;;  %v1105_v22 = vmov 29   ;;  %v1106_v23 = vmov 18   ;;  %v1107_v24 = vmov 31   ;;  %s1267_s17 = sld [smem:[#allocation3 + $0x4]]  ;;  %s1283_s3 = scalar_lea.vmem %s1384_s5, %s1194_s6 }
  0x27   : > { %320 = vperm.xlu1 %1005, %v1200_v2   ;;  %292 = vperm.xlu0 %1003, %v1200_v2   ;;  %v1108_v25 = vmov 19   ;;  %v1109_v26 = vmov 21   ;;  %v1110_v27 = vmov 22   ;;  %v1111_v28 = vmov 24   ;;  %s1272_s18 = sld [smem:[#allocation3 + $0x5]]  ;;  %s1288_s24 = sld [smem:[#allocation3 + $0x6]] }
  0x28   : > { %v1112_v29 = vmov 25   ;;  %v1113_v30 = vmov 27   ;;  %v1114_v31 = vmov 28   ;;  %v1115_v32 = vmov 30   ;;  %s907_s27 = sld [smem:[#allocation3 + $0x7]]  ;;  %s908_s28 = sld [smem:[#allocation3 + $0x8]] }
  0x29   : > { %v295_v33 = vlaneseq  ;;  %v302_v45 = vstv %s301_s10  ;;  %v289_v52 = vstv %s1243_s13  ;;  %v316_v60 = vstv %s1253_s14  ;;  %s909_s29 = sld [smem:[#allocation3 + $0x9]]  ;;  %s910_s30 = sld [smem:[#allocation3 + $0xa]] }
  0x2a   : > { %vm751_vm0 = vcmask 7168   ;;  %v330_v1 = vstv %s1255_s15  ;;  %s911_s7 = sld [smem:[#allocation3 + $0xb]]  ;;  %s912_s8 = sld [smem:[#allocation3 + $0xc]]  ;;  %vm745_vm1 = vcmask 130048  }
  0x2b   : > { %1006 = vset.pattern.permute.xlu1 %v1086_v3  ;;  %1004 = vset.pattern.permute.xlu0 %v1087_v4  ;;  %v296_v34 = vshrl.u32 %v295_v33, 7  ;;  %s913_s9 = sld [smem:[#allocation3 + $0xd]]  ;;  %s914_s10 = sld [smem:[#allocation3 + $0xe]] }
  0x2c   : > { %334 = vperm.xlu1 %1006, %v1200_v2   ;;  %306 = vperm.xlu0 %1004, %v1200_v2   ;;  %s915_s11 = sld [smem:[#allocation3 + $0xf]]  ;;  %s916_s14 = sld [smem:[#allocation3 + $0x10]] }
  0x2d   : > { %v1234_v35 = vsub.s32 0, %v296_v34  ;;  %v1236_v36 = vsub.s32 2, %v296_v34  ;;  %v1247_v39 = vsub.s32 3, %v296_v34  ;;  %v1249_v40 = vsub.s32 1, %v296_v34  ;;  %s917_s15 = sld [smem:[#allocation3 + $0x11]]  ;;  %s921_s19 = sld [smem:[#allocation3 + $0x15]] }
  0x2e   : > { %v1261_v48 = vsub.s32 4, %v296_v34  ;;  %v1265_v51 = vsub.s32 5, %v296_v34  ;;  %v1277_v62 = vsub.s32 6, %v296_v34  ;;  %s922_s20 = sld [smem:[#allocation3 + $0x16]]  ;;  %s278_s13 = scalar_lea.vmem %s1383_s4, %s1194_s6 }
  0x2f   : > { %v298_v38 = vrot.slane %v1241_v37, %v1234_v35  ;;  %v326_v41 = vrot.slane %v1241_v37, %v1236_v36  ;;  %v340_v46 = vrot.slane %v1241_v37, %v1247_v39  ;;  %v312_v47 = vrot.slane %v1241_v37, %v1249_v40 }
  0x30   : > { %1007 = vset.pattern.permute.xlu1 %v1088_v5  ;;  %1008 = vset.pattern.permute.xlu0 %v1089_v6  ;;  %v354_v58 = vrot.slane %v1241_v37, %v1261_v48  ;;  %v368_v61 = vrot.slane %v1241_v37, %v1265_v51 }
  0x31   : > { %348 = vperm.xlu1 %1007, %v1200_v2   ;;  %362 = vperm.xlu0 %1008, %v1200_v2  }
  0x35   : > { %1009 = vset.pattern.permute.xlu1 %v1090_v7  ;;  %1011 = vset.pattern.permute.xlu0 %v1091_v8  ;;  %v344_v7 = vstv %s1263_s16  ;;  %s918_s16 = sld [smem:[#allocation3 + $0x12]] }
  0x36   : > { %376 = vperm.xlu1 %1009, %v1200_v2   ;;  %404 = vperm.xlu0 %1011, %v1200_v2  }
  0x3a   : > { %1010 = vset.pattern.permute.xlu1 %v1092_v9  ;;  %1014 = vset.pattern.permute.xlu0 %v1093_v10 }
  0x3b   : > { %390 = vperm.xlu1 %1010, %v1200_v2   ;;  %446 = vperm.xlu0 %1014, %v1200_v2  }
  0x3f   : > { %1012 = vset.pattern.permute.xlu1 %v1094_v11  ;;  %1017 = vset.pattern.permute.xlu0 %v1095_v12  ;;  %v358_v12 = vstv %s1267_s17  ;;  %s919_s17 = sld [smem:[#allocation3 + $0x13]] }
  0x40   : > { %418 = vperm.xlu1 %1012, %v1200_v2   ;;  %488 = vperm.xlu0 %1017, %v1200_v2  }
  0x44   : > { %1013 = vset.pattern.permute.xlu1 %v1096_v13  ;;  %1020 = vset.pattern.permute.xlu0 %v1097_v14  ;;  %v382_v13 = vrot.slane %v1241_v37, %v1277_v62  ;;  %v1297_v14 = vld [vmem:[%s1380_s1 + $0x8] sm:$0xff] }
  0x45   : > { %432 = vperm.xlu1 %1013, %v1200_v2   ;;  %530 = vperm.xlu0 %1020, %v1200_v2  }
  0x49   : > { %1015 = vset.pattern.permute.xlu1 %v1098_v15  ;;  %1023 = vset.pattern.permute.xlu0 %v1099_v16 }
  0x4a   : > { %460 = vperm.xlu1 %1015, %v1200_v2   ;;  %572 = vperm.xlu0 %1023, %v1200_v2  }
  0x4e   : > { %1016 = vset.pattern.permute.xlu1 %v1100_v17  ;;  %1026 = vset.pattern.permute.xlu0 %v1101_v18  ;;  %v1299_v17 = vsub.s32 7, %v296_v34 }
  0x4f   : > { %474 = vperm.xlu1 %1016, %v1200_v2   ;;  %614 = vperm.xlu0 %1026, %v1200_v2  }
  0x53   : > { %1018 = vset.pattern.permute.xlu1 %v1102_v19  ;;  %1029 = vset.pattern.permute.xlu0 %v1103_v20  ;;  %v372_v20 = vstv %s1272_s18  ;;  %s920_s18 = sld [smem:[#allocation3 + $0x14]] }
  0x54   : > { %502 = vperm.xlu1 %1018, %v1200_v2   ;;  %656 = vperm.xlu0 %1029, %v1200_v2  }
  0x58   : > { %1019 = vset.pattern.permute.xlu1 %v1104_v21  ;;  %1032 = vset.pattern.permute.xlu0 %v1105_v22 }
  0x59   : > { %516 = vperm.xlu1 %1019, %v1200_v2   ;;  %698 = vperm.xlu0 %1032, %v1200_v2  }
  0x5d   : > { %1021 = vset.pattern.permute.xlu1 %v1106_v23  ;;  %1035 = vset.pattern.permute.xlu0 %v1107_v24  ;;  %v410_v23 = vrot.slane %v1297_v14, %v1234_v35 }
  0x5e   : > { %544 = vperm.xlu1 %1021, %v1200_v2  }
  0x62   : > { %1022 = vset.pattern.permute.xlu1 %v1108_v25 }
  0x63   : > { %558 = vperm.xlu1 %1022, %v1200_v2  }
  0x67   : > { %1024 = vset.pattern.permute.xlu1 %v1109_v26 }
  0x68   : > { %586 = vperm.xlu1 %1024, %v1200_v2  }
  0x6c   : > { %1025 = vset.pattern.permute.xlu1 %v1110_v27 }
  0x6d   : > { %600 = vperm.xlu1 %1025, %v1200_v2  }
  0x71   : > { %1027 = vset.pattern.permute.xlu1 %v1111_v28  ;;  %v396_v28 = vrot.slane %v1241_v37, %v1299_v17 }
  0x72   : > { %628 = vperm.xlu1 %1027, %v1200_v2  }
  0x76   : > { %1028 = vset.pattern.permute.xlu1 %v1112_v29 }
  0x77   : > { %642 = vperm.xlu1 %1028, %v1200_v2  }
  0x7b   : > { %1030 = vset.pattern.permute.xlu1 %v1113_v30  ;;  %v386_v30 = vstv %s1288_s24  ;;  %s923_s24 = sld [smem:[#allocation3 + $0x17]] }
  0x7c   : > { %670 = vperm.xlu1 %1030, %v1200_v2  }
  0x80   : > { %1031 = vset.pattern.permute.xlu1 %v1114_v31 }
  0x81   : > { %684 = vperm.xlu1 %1031, %v1200_v2  }
  0x85   : > { %1033 = vset.pattern.permute.xlu1 %v1115_v32 }
  0x86   : > { %712 = vperm.xlu1 %1033, %v1200_v2  }
  0x8a   : > { %1034 = vset.pattern.permute.xlu1 %v1107_v24 }
  0x8b   : > { %726 = vperm.xlu1 %1034, %v1200_v2   ;;  %v1116_v2 = vmov 0.0  }
  0x8c   : > { %752 = vst.msk [vmem:[%s1283_s3] sm:$0xff] %vm751_vm0, %v1116_v2  ;;  %v466_v2 = vrot.slane %v1297_v14, %v1261_v48 }
  0xa6   : > { %v321_v42 = vpop.permute.xlu1 %320  ;;  %v293_v43 = vpop.permute.xlu0 %292 }
  0xa7   : > { %v299_v44 = vadd.f32 %v298_v38, %v293_v43  ;;  %v327_v49 = vadd.f32 %v326_v41, %v321_v42  ;;  %v400_v42 = vstv %s907_s27  ;;  %v424_v43 = vrot.slane %v1297_v14, %v1249_v40  ;;  %s924_s27 = sld [smem:[#allocation3 + $0x18]] }
  0xa9   : > { %v300_v50 = vmax.f32 %v299_v44, 0.0  ;;  %v328_v59 = vmax.f32 %v327_v49, 0.0 }
  0xab   : > { %v303_v53 = vmul.f32 %v302_v45, %v300_v50  ;;  %v335_v54 = vpop.permute.xlu1 %334  ;;  %v307_v55 = vpop.permute.xlu0 %306  ;;  %v331_v10 = vmul.f32 %v330_v1, %v328_v59  ;;  %v452_v50 = vrot.slane %v1297_v14, %v1247_v39  ;;  %v442_v1 = vstv %s910_s30  ;;  %s927_s30 = sld [smem:[#allocation3 + $0x1b]] }
  0xac   : > { %v341_v56 = vadd.f32 %v340_v46, %v335_v54  ;;  %v313_v57 = vadd.f32 %v312_v47, %v307_v55  ;;  %v414_v46 = vstv %s908_s28  ;;  %s925_s28 = sld [smem:[#allocation3 + $0x19]] }
  0xad   : > { %v304_v63 = vadd.f32 %v303_v53, %v289_v52 }
  0xae   : > { %v314_v0 = vmax.f32 %v313_v57, 0.0  ;;  %v342_v3 = vmax.f32 %v341_v56, 0.0  ;;  %v438_v56 = vrot.slane %v1297_v14, %v1236_v36  ;;  %v428_v57 = vstv %s909_s29  ;;  %s926_s29 = sld [smem:[#allocation3 + $0x1a]] }
  0xb0   : > { %v317_v4 = vmul.f32 %v316_v60, %v314_v0  ;;  %v349_v5 = vpop.permute.xlu1 %348  ;;  %v363_v6 = vpop.permute.xlu0 %362  ;;  %v345_v18 = vmul.f32 %v344_v7, %v342_v3 }
  0xb1   : > { %v355_v8 = vadd.f32 %v354_v58, %v349_v5  ;;  %v369_v9 = vadd.f32 %v368_v61, %v363_v6  ;;  %v456_v5 = vstv %s911_s7  ;;  %s928_s7 = sld [smem:[#allocation3 + $0x1c]] }
  0xb2   : > { %v318_v11 = vadd.f32 %v317_v4, %v304_v63 }
  0xb3   : > { %v356_v15 = vmax.f32 %v355_v8, 0.0  ;;  %v370_v16 = vmax.f32 %v369_v9, 0.0  ;;  %v494_v9 = vrot.slane %v1297_v14, %v1277_v62 }
  0xb4   : > { %v332_v19 = vadd.f32 %v331_v10, %v318_v11 }
  0xb5   : > { %v359_v21 = vmul.f32 %v358_v12, %v356_v15  ;;  %v377_v22 = vpop.permute.xlu1 %376  ;;  %v405_v26 = vpop.permute.xlu0 %404  ;;  %v373_v27 = vmul.f32 %v372_v20, %v370_v16  ;;  %v480_v15 = vrot.slane %v1297_v14, %v1265_v51  ;;  %v470_v16 = vstv %s912_s8  ;;  %s929_s8 = sld [smem:[#allocation3 + $0x1d]] }
  0xb6   : > { %v346_v24 = vadd.f32 %v345_v18, %v332_v19  ;;  %v383_v25 = vadd.f32 %v382_v13, %v377_v22  ;;  %v411_v32 = vadd.f32 %v410_v23, %v405_v26 }
  0xb8   : > { %v360_v29 = vadd.f32 %v359_v21, %v346_v24  ;;  %v384_v31 = vmax.f32 %v383_v25, 0.0  ;;  %v412_v45 = vmax.f32 %v411_v32, 0.0  ;;  %v484_v24 = vstv %s913_s9  ;;  %s930_s9 = sld [smem:[#allocation3 + $0x1e]] }
  0xb9   : > { %v508_v25 = vrot.slane %v1297_v14, %v1299_v17 }
  0xba   : > { %v391_v33 = vpop.permute.xlu1 %390  ;;  %v374_v34 = vadd.f32 %v373_v27, %v360_v29  ;;  %v387_v38 = vmul.f32 %v386_v30, %v384_v31  ;;  %v447_v53 = vpop.permute.xlu0 %446  ;;  %v415_v55 = vmul.f32 %v414_v46, %v412_v45  ;;  %v1324_v29 = vld [vmem:[%s1380_s1 + $0x10] sm:$0xff] }
  0xbb   : > { %v397_v41 = vadd.f32 %v396_v28, %v391_v33  ;;  %v453_v59 = vadd.f32 %v452_v50, %v447_v53  ;;  %v498_v28 = vstv %s914_s10  ;;  %v536_v33 = vrot.slane %v1324_v29, %v1249_v40  ;;  %s931_s10 = sld [smem:[#allocation3 + $0x1f]] }
  0xbc   : > { %v388_v47 = vadd.f32 %v387_v38, %v374_v34  ;;  %v526_v50 = vstv %s916_s14 }
  0xbd   : > { %v398_v44 = vmax.f32 %v397_v41, 0.0  ;;  %v454_v4 = vmax.f32 %v453_v59, 0.0  ;;  %v578_v59 = vrot.slane %v1324_v29, %v1261_v48 }
  0xbf   : > { %v401_v49 = vmul.f32 %v400_v42, %v398_v44  ;;  %v419_v37 = vpop.permute.xlu1 %418  ;;  %v489_v11 = vpop.permute.xlu0 %488  ;;  %v457_v13 = vmul.f32 %v456_v5, %v454_v4  ;;  %v522_v42 = vrot.slane %v1324_v29, %v1234_v35 }
  0xc0   : > { %v425_v52 = vadd.f32 %v424_v43, %v419_v37  ;;  %v495_v19 = vadd.f32 %v494_v9, %v489_v11  ;;  %v512_v43 = vstv %s915_s11  ;;  %v568_v9 = vstv %s919_s17 }
  0xc1   : > { %v402_v54 = vadd.f32 %v401_v49, %v388_v47 }
  0xc2   : > { %v426_v58 = vmax.f32 %v425_v52, 0.0  ;;  %v496_v27 = vmax.f32 %v495_v19, 0.0  ;;  %v550_v52 = vrot.slane %v1324_v29, %v1236_v36  ;;  %v620_v19 = vrot.slane %v1324_v29, %v1299_v17 }
  0xc3   : > { %v416_v61 = vadd.f32 %v415_v55, %v402_v54  ;;  %v540_v55 = vstv %s917_s15 }
  0xc4   : > { %v433_v60 = vpop.permute.xlu1 %432  ;;  %v429_v63 = vmul.f32 %v428_v57, %v426_v58  ;;  %v531_v38 = vpop.permute.xlu0 %530  ;;  %v499_v14 = vmul.f32 %v498_v28, %v496_v27  ;;  %v1345_v28 = vld [vmem:[%s1380_s1 + $0x18] sm:$0xff] }
  0xc5   : > { %v439_v0 = vadd.f32 %v438_v56, %v433_v60  ;;  %v537_v45 = vadd.f32 %v536_v33, %v531_v38  ;;  %v634_v38 = vrot.slane %v1345_v28, %v1234_v35 }
  0xc6   : > { %v430_v6 = vadd.f32 %v429_v63, %v416_v61 }
  0xc7   : > { %v440_v3 = vmax.f32 %v439_v0, 0.0  ;;  %v538_v54 = vmax.f32 %v537_v45, 0.0  ;;  %v662_v45 = vrot.slane %v1345_v28, %v1236_v36  ;;  %v676_v36 = vrot.slane %v1345_v28, %v1247_v39 }
  0xc9   : > { %v443_v7 = vmul.f32 %v442_v1, %v440_v3  ;;  %v461_v8 = vpop.permute.xlu1 %460  ;;  %v573_v61 = vpop.permute.xlu0 %572  ;;  %v541_v0 = vmul.f32 %v540_v55, %v538_v54  ;;  %v564_v1 = vrot.slane %v1324_v29, %v1247_v39 }
  0xca   : > { %v467_v10 = vadd.f32 %v466_v2, %v461_v8  ;;  %v554_v2 = vstv %s918_s16  ;;  %v579_v4 = vadd.f32 %v578_v59, %v573_v61  ;;  %v666_v61 = vstv %s926_s29 }
  0xcb   : > { %v444_v12 = vadd.f32 %v443_v7, %v430_v6 }
  0xcc   : > { %v468_v18 = vmax.f32 %v467_v10, 0.0  ;;  %v592_v10 = vrot.slane %v1324_v29, %v1265_v51 }
  0xcd   : > { %v458_v21 = vadd.f32 %v457_v13, %v444_v12  ;;  %v580_v12 = vmax.f32 %v579_v4, 0.0  ;;  %v582_v13 = vstv %s920_s18 }
  0xce   : > { %v475_v20 = vpop.permute.xlu1 %474  ;;  %v471_v22 = vmul.f32 %v470_v16, %v468_v18 }
  0xcf   : > { %v481_v23 = vadd.f32 %v480_v15, %v475_v20 }
  0xd0   : > { %v472_v30 = vadd.f32 %v471_v22, %v458_v21  ;;  %v615_v21 = vpop.permute.xlu0 %614 }
  0xd1   : > { %v482_v26 = vmax.f32 %v481_v23, 0.0  ;;  %v583_v23 = vmul.f32 %v582_v13, %v580_v12  ;;  %v621_v27 = vadd.f32 %v620_v19, %v615_v21  ;;  %v694_v13 = vstv %s928_s7 }
  0xd3   : > { %v485_v31 = vmul.f32 %v484_v24, %v482_v26  ;;  %v503_v32 = vpop.permute.xlu1 %502  ;;  %v606_v24 = vrot.slane %v1324_v29, %v1277_v62  ;;  %v624_v29 = vstv %s923_s24 }
  0xd4   : > { %v509_v34 = vadd.f32 %v508_v25, %v503_v32  ;;  %v596_v25 = vstv %s921_s19 }
  0xd5   : > { %v486_v41 = vadd.f32 %v485_v31, %v472_v30 }
  0xd6   : > { %v510_v44 = vmax.f32 %v509_v34, 0.0  ;;  %v610_v34 = vstv %s922_s20 }
  0xd7   : > { %v500_v47 = vadd.f32 %v499_v14, %v486_v41  ;;  %v622_v14 = vmax.f32 %v621_v27, 0.0 }
  0xd8   : > { %v517_v46 = vpop.permute.xlu1 %516  ;;  %v513_v49 = vmul.f32 %v512_v43, %v510_v44 }
  0xd9   : > { %v523_v37 = vadd.f32 %v522_v42, %v517_v46 }
  0xda   : > { %v514_v56 = vadd.f32 %v513_v49, %v500_v47  ;;  %v657_v47 = vpop.permute.xlu0 %656 }
  0xdb   : > { %v524_v53 = vmax.f32 %v523_v37, 0.0  ;;  %v625_v37 = vmul.f32 %v624_v29, %v622_v14 }
  0xdd   : > { %v527_v57 = vmul.f32 %v526_v50, %v524_v53  ;;  %v545_v58 = vpop.permute.xlu1 %544  ;;  %v648_v50 = vrot.slane %v1345_v28, %v1249_v40  ;;  %v663_v53 = vadd.f32 %v662_v45, %v657_v47  ;;  %v704_v40 = vrot.slane %v1345_v28, %v1265_v51 }
  0xde   : > { %v551_v60 = vadd.f32 %v550_v52, %v545_v58  ;;  %v638_v52 = vstv %s924_s27  ;;  %v652_v58 = vstv %s925_s28  ;;  %v718_v51 = vrot.slane %v1345_v28, %v1277_v62 }
  0xdf   : > { %v528_v63 = vadd.f32 %v527_v57, %v514_v56 }
  0xe0   : > { %v552_v3 = vmax.f32 %v551_v60, 0.0  ;;  %v664_v60 = vmax.f32 %v663_v53, 0.0 }
  0xe1   : > { %v542_v6 = vadd.f32 %v541_v0, %v528_v63 }
  0xe2   : > { %v559_v5 = vpop.permute.xlu1 %558  ;;  %v555_v7 = vmul.f32 %v554_v2, %v552_v3  ;;  %v699_v3 = vpop.permute.xlu0 %698 }
  0xe3   : > { %v565_v8 = vadd.f32 %v564_v1, %v559_v5  ;;  %v667_v5 = vmul.f32 %v666_v61, %v664_v60 }
  0xe4   : > { %v556_v15 = vadd.f32 %v555_v7, %v542_v6  ;;  %v690_v6 = vrot.slane %v1345_v28, %v1261_v48  ;;  %v680_v7 = vstv %s927_s30 }
  0xe5   : > { %v566_v11 = vmax.f32 %v565_v8, 0.0  ;;  %v705_v8 = vadd.f32 %v704_v40, %v699_v3 }
  0xe7   : > { %v569_v16 = vmul.f32 %v568_v9, %v566_v11  ;;  %v587_v18 = vpop.permute.xlu1 %586 }
  0xe8   : > { %v593_v20 = vadd.f32 %v592_v10, %v587_v18  ;;  %v708_v18 = vstv %s929_s8 }
  0xe9   : > { %v570_v22 = vadd.f32 %v569_v16, %v556_v15  ;;  %v706_v16 = vmax.f32 %v705_v8, 0.0 }
  0xea   : > { %v594_v26 = vmax.f32 %v593_v20, 0.0 }
  0xeb   : > { %v584_v31 = vadd.f32 %v583_v23, %v570_v22  ;;  %v709_v23 = vmul.f32 %v708_v18, %v706_v16 }
  0xec   : > { %v601_v30 = vpop.permute.xlu1 %600  ;;  %v597_v32 = vmul.f32 %v596_v25, %v594_v26  ;;  %v722_v25 = vstv %s930_s9 }
  0xed   : > { %v607_v33 = vadd.f32 %v606_v24, %v601_v30  ;;  %v732_v24 = vrot.slane %v1345_v28, %v1299_v17 }
  0xee   : > { %v598_v42 = vadd.f32 %v597_v32, %v584_v31  ;;  %v736_v32 = vstv %s931_s10 }
  0xef   : > { %v608_v41 = vmax.f32 %v607_v33, 0.0 }
  0xf1   : > { %v611_v43 = vmul.f32 %v610_v34, %v608_v41  ;;  %v629_v44 = vpop.permute.xlu1 %628 }
  0xf2   : > { %v635_v46 = vadd.f32 %v634_v38, %v629_v44 }
  0xf3   : > { %v612_v49 = vadd.f32 %v611_v43, %v598_v42  ;;  %v753_v43 = vld [vmem:[%s1283_s3] sm:$0xff] }
  0xf4   : > { %v636_v35 = vmax.f32 %v635_v46, 0.0 }
  0xf5   : > { %v626_v55 = vadd.f32 %v625_v37, %v612_v49 }
  0xf6   : > { %v643_v54 = vpop.permute.xlu1 %642  ;;  %v639_v56 = vmul.f32 %v638_v52, %v636_v35 }
  0xf7   : > { %v649_v57 = vadd.f32 %v648_v50, %v643_v54 }
  0xf8   : > { %v640_v63 = vadd.f32 %v639_v56, %v626_v55 }
  0xf9   : > { %v650_v59 = vmax.f32 %v649_v57, 0.0 }
  0xfb   : > { %v653_v0 = vmul.f32 %v652_v58, %v650_v59  ;;  %v671_v1 = vpop.permute.xlu1 %670 }
  0xfc   : > { %v677_v2 = vadd.f32 %v676_v36, %v671_v1 }
  0xfd   : > { %v654_v4 = vadd.f32 %v653_v0, %v640_v63 }
  0xfe   : > { %v678_v39 = vmax.f32 %v677_v2, 0.0 }
  0xff   : > { %v668_v10 = vadd.f32 %v667_v5, %v654_v4 }
 0x100   : > { %v685_v9 = vpop.permute.xlu1 %684  ;;  %v681_v11 = vmul.f32 %v680_v7, %v678_v39 }
 0x101   : > { %v691_v12 = vadd.f32 %v690_v6, %v685_v9 }
 0x102   : > { %v682_v19 = vadd.f32 %v681_v11, %v668_v10 }
 0x103   : > { %v692_v15 = vmax.f32 %v691_v12, 0.0 }
 0x105   : > { %v695_v20 = vmul.f32 %v694_v13, %v692_v15  ;;  %v713_v21 = vpop.permute.xlu1 %712 }
 0x106   : > { %v719_v48 = vadd.f32 %v718_v51, %v713_v21 }
 0x107   : > { %v696_v22 = vadd.f32 %v695_v20, %v682_v19 }
 0x108   : > { %v720_v26 = vmax.f32 %v719_v48, 0.0 }
 0x109   : > { %v710_v30 = vadd.f32 %v709_v23, %v696_v22 }
 0x10a   : > { %v727_v27 = vpop.permute.xlu1 %726  ;;  %v723_v31 = vmul.f32 %v722_v25, %v720_v26 }
 0x10b   : > { %v733_v62 = vadd.f32 %v732_v24, %v727_v27 }
 0x10c   : > { %v724_v34 = vadd.f32 %v723_v31, %v710_v30 }
 0x10d   : > { %v734_v33 = vmax.f32 %v733_v62, 0.0 }
 0x10f   : > { %v737_v38 = vmul.f32 %v736_v32, %v734_v33 }
 0x111   : > { %v738_v41 = vadd.f32 %v737_v38, %v724_v34 }
 0x113   : > { %v932_v14 = vmul.f32 -1.442695, %v738_v41 }
 0x115   : > { %1036 = vpow2.f32 %v932_v14 }
 0x11f   : > { %v1037_v29 = vpop.eup %1036 }
 0x120   : > { %v742_v42 = vadd.f32 1.0, %v1037_v29 }
 0x122   : > { %1038 = vrcp.f32 %v742_v42 }
 0x12c   : > { %v1039_v17 = vpop.eup %1038 }
 0x12d   : > { %v754_v28 = vsel %vm745_vm1, %v1039_v17, 0.0  ;;  %746 = vst.msk [vmem:[%s278_s13] sm:$0xff] %vm745_vm1, %v1039_v17 }
 0x12e   : > { %755 = vadd.xlane.f32.xlu0 %v754_v28 }
 0x1bb   : > { %v756_v44 = vpop.xlane.xlu0 %755 }
 0x1bc   : > { %v757_v45 = vadd.f32 %v756_v44, %v753_v43 }
 0x1be   : > { %759 = vst.msk [vmem:[%s1283_s3] sm:$0xff] %vm751_vm0, %v757_v45 }
 0x1bf PF: > { %s18_s22 = sadd.s32 1, %s1081_s22   ;;  %s1387_s20 = smov %s1077_s21 }
 0x1c0   : > { %p15_p2 = scmp.ge.s32.totalorder %s18_s22, 4   ;;  %s1388_s21 = smov %s1390_s23 }
 0x1c2   :  { %17 = sbr.rel (!%p15_p2) target bundleno = 4 (0x4), region = 90 }
 0x1c9   :  { %799 = vsyncpa [#allocation4], 1 }
 0x1ca   :  { %801 = vsyncpa [#allocation4 + $0x1], 1 }

</bundles_post_ra>
